<compile_context>
chip_gen: v6e
topology: v6e:2x2x1
jax: 0.10.0
libtpu: 0.0.40
codegen_flags: <defaults>
</compile_context>

<pallas_src>
import numpy as np
import jax
import jax.numpy as jnp
from jax import lax
from jax.experimental import pallas as pl
from jax.experimental.pallas import tpu as pltpu

LANE = 128


def cnn_kernel(tok_ref, proj_ref, bc_ref, wl_ref, bl_ref, out_ref):
    """Fused one-hot gather-conv + bias + ReLU + max-pool(T) + linear.

    tok_ref : (3, TB*T, 1) int32  token at t-1 / t / t+1 (out-of-range -> sentinel V)
    proj_ref: (3, V, Op)   bf16   per-offset (embedding @ conv-tap) tables, lane-padded
    bc_ref  : (1, Op)      f32    conv bias (lane-padded)
    wl_ref  : (Op, Lp)     bf16   linear weight (transposed, lane-padded)
    bl_ref  : (1, Lp)      f32    linear bias (lane-padded)
    out_ref : (TB, Lp)     f32    lane-dense logits (valid cols sliced outside)
    """
    _, TBT, _ = tok_ref.shape
    V = proj_ref.shape[1]
    O_pad = proj_ref.shape[2]
    TB = out_ref.shape[0]
    T = TBT // TB

    vocab_iota = lax.broadcasted_iota(jnp.int32, (TBT, V), 1)

    def tap(dt):
        # Exact embedding-row selection via one-hot @ table on the MXU.
        one_hot = (tok_ref[dt] == vocab_iota).astype(jnp.bfloat16)        # (TBT, V)
        return jnp.dot(one_hot, proj_ref[dt],
                       preferred_element_type=jnp.float32)                # (TBT, Op) f32

    # 3-tap conv (padding already encoded via the sentinel token) + bias.
    conv = tap(0) + tap(1) + tap(2) + bc_ref[...]

    # ReLU + max-pool over time, all in f32 (VPU/XLU).
    relu = jnp.maximum(conv, 0.0)
    pooled = jnp.max(relu.reshape(TB, T, O_pad), axis=1)                  # (TB, Op) f32

    # Final linear: bf16 MXU matmul, f32 accumulation, f32 bias add.
    out_ref[...] = jnp.dot(pooled.astype(wl_ref.dtype), wl_ref[...],
                           preferred_element_type=jnp.float32) + bl_ref[...]


def cnn_forward(x_tokens, emb_table, conv_w, conv_b, lin_w, lin_b, *, batch_tile=32):
    """Wrapper: shifted-token construction + weight folding, then the Pallas call."""
    B, T = x_tokens.shape
    V, E = emb_table.shape
    O = conv_w.shape[0]
    L = lin_w.shape[0]

    O_pad = pl.cdiv(O, LANE) * LANE
    L_pad = pl.cdiv(L, LANE) * LANE
    TB = batch_tile                      # TB*T = 256 rows / MXU pass at T=8
    B_pad = pl.cdiv(B, TB) * TB
    TBT = TB * T

    # ---- shifted token windows (prev, cur, next); OOB -> out-of-vocab sentinel ----
    # Sentinel V never matches the in-kernel iota [0, V) -> all-zero one-hot row,
    # i.e. the conv's zero padding at t=-1 / t=T, independent of padding_idx.
    sent = jnp.full((B_pad, 1), V, jnp.int32)
    x_p = jnp.pad(x_tokens.astype(jnp.int32), ((0, B_pad - B), (0, 0)))
    tok_prev = jnp.concatenate([sent, x_p[:, :-1]], axis=1)
    tok_next = jnp.concatenate([x_p[:, 1:], sent], axis=1)
    toks = jnp.stack([tok_prev, x_p, tok_next], axis=0).reshape(3, B_pad * T, 1)

    # ---- fold Embedding @ conv tap into per-offset projection tables ----
    # proj[dt, v, o] = sum_e emb[v, e] * conv_w[o, 0, dt, e]   (computed in f32)
    w = conv_w[:, 0, :, :]                                               # (O, 3, E)
    proj = jnp.einsum('ve,ode->dvo', emb_table, w)                       # (3, V, O) f32
    proj = jnp.pad(proj, ((0, 0), (0, 0), (0, O_pad - O))).astype(jnp.bfloat16)

    bc = jnp.pad(conv_b, (0, O_pad - O)).reshape(1, O_pad).astype(jnp.float32)
    wl = jnp.pad(lin_w.T, ((0, O_pad - O), (0, L_pad - L))).astype(jnp.bfloat16)
    bl = jnp.pad(lin_b, (0, L_pad - L)).reshape(1, L_pad).astype(jnp.float32)

    out = pl.pallas_call(
        cnn_kernel,
        out_shape=jax.ShapeDtypeStruct((B_pad, L_pad), jnp.float32),
        grid_spec=pltpu.PrefetchScalarGridSpec(
            num_scalar_prefetch=0,
            grid=(B_pad // TB,),
            in_specs=[
                pl.BlockSpec((3, TBT, 1), lambda i: (0, i, 0)),      # tokens: tiled over batch
                pl.BlockSpec((3, V, O_pad), lambda i: (0, 0, 0)),    # proj tables: resident
                pl.BlockSpec((1, O_pad), lambda i: (0, 0)),          # conv bias: resident
                pl.BlockSpec((O_pad, L_pad), lambda i: (0, 0)),      # linear weight: resident
                pl.BlockSpec((1, L_pad), lambda i: (0, 0)),          # linear bias: resident
            ],
            out_specs=pl.BlockSpec((TB, L_pad), lambda i: (i, 0)),
        ),
        compiler_params=pltpu.CompilerParams(
            # Large batches give >=2 grid steps that shard across v7x's 2 TCs.
            dimension_semantics=("parallel",),
        ),
    )(toks, proj, bc, wl, bl)
    return out[:B, :L]


def ref_forward_matched(x_tokens, emb_table, conv_w, conv_b, lin_w, lin_b):
    """Pure-JAX reference matched to the kernel's bf16 numerics (same ordering)."""
    B, T = x_tokens.shape
    w = conv_w[:, 0, :, :]                                               # (O, 3, E)
    proj = jnp.einsum('ve,ode->dvo', emb_table, w)                       # (3, V, O) f32
    proj = proj.astype(jnp.bfloat16).astype(jnp.float32)
    tok_prev = jnp.concatenate([jnp.zeros((B, 1), x_tokens.dtype), x_tokens[:, :-1]], 1)
    tok_next = jnp.concatenate([x_tokens[:, 1:], jnp.zeros((B, 1), x_tokens.dtype)], 1)
    t = jnp.arange(T)
    c_prev = jnp.where((t >= 1)[None, :, None], proj[0][tok_prev], 0.0)
    c_cur = proj[1][x_tokens]
    c_next = jnp.where((t <= T - 2)[None, :, None], proj[2][tok_next], 0.0)
    conv = c_prev + c_cur + c_next + conv_b[None, None, :]
    pooled = jnp.max(jnp.maximum(conv, 0.0), axis=1)
    return (jnp.dot(pooled.astype(jnp.bfloat16), lin_w.T.astype(jnp.bfloat16),
                    preferred_element_type=jnp.float32) + lin_b[None, :])


def ref_forward_f32(x_tokens, emb_table, conv_w, conv_b, lin_w, lin_b):
    """Pure-f32 reference mirroring the PyTorch forward exactly (loose-tol check)."""
    B, T = x_tokens.shape
    emb = emb_table[x_tokens]                                            # (B, T, E)
    emb_pad = jnp.pad(emb, ((0, 0), (1, 1), (0, 0)))
    w = conv_w[:, 0, :, :]                                               # (O, 3, E)
    conv = sum(jnp.einsum('bte,oe->bto', emb_pad[:, dt:dt + T, :], w[:, dt, :])
               for dt in range(3)) + conv_b[None, None, :]
    pooled = jnp.max(jnp.maximum(conv, 0.0), axis=1)
    return pooled @ lin_w.T + lin_b[None, :]


if __name__ == "__main__":
    # Small shapes consistent with the module.
    vocab_size, embedding_dim, output_dim, label_num = 32, 32, 16, 4
    B, T = 2, 8

    key = jax.random.PRNGKey(0)
    k_tok, k_emb, k_cw, k_cb, k_lw, k_lb = jax.random.split(key, 6)

    # Deterministic parameter init (synthetic; not a checkpoint load).
    emb_table = jax.random.normal(k_emb, (vocab_size, embedding_dim), jnp.float32) * 0.1
    emb_table = emb_table.at[0].set(0.0)  # padding_idx=0 -> zero row
    conv_w = jax.random.normal(k_cw, (output_dim, 1, 3, embedding_dim), jnp.float32) * 0.1
    conv_b = jax.random.normal(k_cb, (output_dim,), jnp.float32) * 0.1
    lin_w = jax.random.normal(k_lw, (label_num, output_dim), jnp.float32) * 0.1
    lin_b = jax.random.normal(k_lb, (label_num,), jnp.float32) * 0.1

    # Tokens include index 0 to exercise the padding embedding row.
    x_tokens = jax.random.randint(k_tok, (B, T), 0, vocab_size, jnp.int32)

    out = cnn_forward(x_tokens, emb_table, conv_w, conv_b, lin_w, lin_b)
    out = jax.block_until_ready(out)

    # Tight check against a reference with the kernel's (intentional) bf16 numerics.
    ref_m = ref_forward_matched(x_tokens, emb_table, conv_w, conv_b, lin_w, lin_b)
    np.testing.assert_allclose(np.asarray(out), np.asarray(ref_m), rtol=1e-4, atol=1e-5)

    # Loose check against the pure-f32 PyTorch-style forward (bf16 weight cast only).
    ref_f = ref_forward_f32(x_tokens, emb_table, conv_w, conv_b, lin_w, lin_b)
    np.testing.assert_allclose(np.asarray(out), np.asarray(ref_f), rtol=5e-2, atol=1e-2)

    print("KERNEL_OK")
</pallas_src>

<mosaic_0001>
module attributes {stable_mosaic.version = 11 : i64} {
  func.func @cnn_kernel(%arg0: i32, %arg1: memref<3x256x1xi32, #tpu.memory_space<vmem>>, %arg2: memref<3x32x128xbf16, #tpu.memory_space<vmem>>, %arg3: memref<1x128xf32, #tpu.memory_space<vmem>>, %arg4: memref<128x128xbf16, #tpu.memory_space<vmem>>, %arg5: memref<1x128xf32, #tpu.memory_space<vmem>>, %arg6: memref<32x128xf32, #tpu.memory_space<vmem>>) attributes {dimension_semantics = [#tpu.dimension_semantics<parallel>], iteration_bounds = array<i64: 1>, scalar_prefetch = 0 : i64, scratch_operands = 0 : i64, tpu.core_type = #tpu.core_type<tc>, window_params = [{transform_indices = @transform_0, window_bounds = array<i64: 3, 256, 1>}, {pipeline_mode = #tpu.pipeline_mode<synchronous>, transform_indices = @transform_1, window_bounds = array<i64: 3, 32, 128>}, {pipeline_mode = #tpu.pipeline_mode<synchronous>, transform_indices = @transform_2, window_bounds = array<i64: 1, 128>}, {pipeline_mode = #tpu.pipeline_mode<synchronous>, transform_indices = @transform_3, window_bounds = array<i64: 128, 128>}, {pipeline_mode = #tpu.pipeline_mode<synchronous>, transform_indices = @transform_4, window_bounds = array<i64: 1, 128>}, {transform_indices = @transform_5, window_bounds = array<i64: 32, 128>}]} {
    %0 = tpu.iota {dimensions = array<i32: 1>} : vector<256x32xi32>
    %c0 = arith.constant 0 : index
    %c0_0 = arith.constant 0 : index
    %c0_1 = arith.constant 0 : index
    %1 = vector.load %arg1[%c0, %c0_0, %c0_1] : memref<3x256x1xi32, #tpu.memory_space<vmem>>, vector<1x256x1xi32>
    %2 = vector.shape_cast %1 : vector<1x256x1xi32> to vector<256x1xi32>
    %3 = vector.broadcast %2 : vector<256x1xi32> to vector<256x32xi32>
    %4 = arith.cmpi eq, %3, %0 : vector<256x32xi32>
    %5 = arith.extui %4 : vector<256x32xi1> to vector<256x32xi32>
    %6 = arith.sitofp %5 : vector<256x32xi32> to vector<256x32xf32>
    %7 = arith.truncf %6 : vector<256x32xf32> to vector<256x32xbf16>
    %c0_2 = arith.constant 0 : index
    %c0_3 = arith.constant 0 : index
    %c0_4 = arith.constant 0 : index
    %8 = vector.load %arg2[%c0_2, %c0_3, %c0_4] : memref<3x32x128xbf16, #tpu.memory_space<vmem>>, vector<1x32x128xbf16>
    %9 = vector.shape_cast %8 : vector<1x32x128xbf16> to vector<32x128xbf16>
    %cst = arith.constant dense<0.000000e+00> : vector<256x128xf32>
    %10 = tpu.matmul %7, %9, %cst {dimension_numbers = #tpu.dot_dimension_numbers<[1], [0], [0], [1], [0, 0, 1, 1], [], []>} : vector<256x32xbf16>, vector<32x128xbf16>, vector<256x128xf32> -> vector<256x128xf32>
    %c1 = arith.constant 1 : index
    %c0_5 = arith.constant 0 : index
    %c0_6 = arith.constant 0 : index
    %11 = vector.load %arg1[%c1, %c0_5, %c0_6] : memref<3x256x1xi32, #tpu.memory_space<vmem>>, vector<1x256x1xi32>
    %12 = vector.shape_cast %11 : vector<1x256x1xi32> to vector<256x1xi32>
    %13 = vector.broadcast %12 : vector<256x1xi32> to vector<256x32xi32>
    %14 = arith.cmpi eq, %13, %0 : vector<256x32xi32>
    %15 = arith.extui %14 : vector<256x32xi1> to vector<256x32xi32>
    %16 = arith.sitofp %15 : vector<256x32xi32> to vector<256x32xf32>
    %17 = arith.truncf %16 : vector<256x32xf32> to vector<256x32xbf16>
    %c1_7 = arith.constant 1 : index
    %c0_8 = arith.constant 0 : index
    %c0_9 = arith.constant 0 : index
    %18 = vector.load %arg2[%c1_7, %c0_8, %c0_9] : memref<3x32x128xbf16, #tpu.memory_space<vmem>>, vector<1x32x128xbf16>
    %19 = vector.shape_cast %18 : vector<1x32x128xbf16> to vector<32x128xbf16>
    %cst_10 = arith.constant dense<0.000000e+00> : vector<256x128xf32>
    %20 = tpu.matmul %17, %19, %cst_10 {dimension_numbers = #tpu.dot_dimension_numbers<[1], [0], [0], [1], [0, 0, 1, 1], [], []>} : vector<256x32xbf16>, vector<32x128xbf16>, vector<256x128xf32> -> vector<256x128xf32>
    %21 = arith.addf %10, %20 : vector<256x128xf32>
    %c2 = arith.constant 2 : index
    %c0_11 = arith.constant 0 : index
    %c0_12 = arith.constant 0 : index
    %22 = vector.load %arg1[%c2, %c0_11, %c0_12] : memref<3x256x1xi32, #tpu.memory_space<vmem>>, vector<1x256x1xi32>
    %23 = vector.shape_cast %22 : vector<1x256x1xi32> to vector<256x1xi32>
    %24 = vector.broadcast %23 : vector<256x1xi32> to vector<256x32xi32>
    %25 = arith.cmpi eq, %24, %0 : vector<256x32xi32>
    %26 = arith.extui %25 : vector<256x32xi1> to vector<256x32xi32>
    %27 = arith.sitofp %26 : vector<256x32xi32> to vector<256x32xf32>
    %28 = arith.truncf %27 : vector<256x32xf32> to vector<256x32xbf16>
    %c2_13 = arith.constant 2 : index
    %c0_14 = arith.constant 0 : index
    %c0_15 = arith.constant 0 : index
    %29 = vector.load %arg2[%c2_13, %c0_14, %c0_15] : memref<3x32x128xbf16, #tpu.memory_space<vmem>>, vector<1x32x128xbf16>
    %30 = vector.shape_cast %29 : vector<1x32x128xbf16> to vector<32x128xbf16>
    %cst_16 = arith.constant dense<0.000000e+00> : vector<256x128xf32>
    %31 = tpu.matmul %28, %30, %cst_16 {dimension_numbers = #tpu.dot_dimension_numbers<[1], [0], [0], [1], [0, 0, 1, 1], [], []>} : vector<256x32xbf16>, vector<32x128xbf16>, vector<256x128xf32> -> vector<256x128xf32>
    %32 = arith.addf %21, %31 : vector<256x128xf32>
    %c0_17 = arith.constant 0 : index
    %c0_18 = arith.constant 0 : index
    %33 = vector.load %arg3[%c0_17, %c0_18] : memref<1x128xf32, #tpu.memory_space<vmem>>, vector<1x128xf32>
    %34 = vector.broadcast %33 : vector<1x128xf32> to vector<256x128xf32>
    %35 = arith.addf %32, %34 : vector<256x128xf32>
    %cst_19 = arith.constant 0.000000e+00 : f32
    %36 = vector.broadcast %cst_19 : f32 to vector<256x128xf32>
    %37 = arith.maximumf %35, %36 : vector<256x128xf32>
    %38 = vector.shape_cast %37 : vector<256x128xf32> to vector<32x8x128xf32>
    %cst_20 = arith.constant dense<0xFF800000> : vector<32x128xf32>
    %39 = vector.multi_reduction <maximumf>, %38, %cst_20 [1] : vector<32x8x128xf32> to vector<32x128xf32>
    %40 = arith.truncf %39 : vector<32x128xf32> to vector<32x128xbf16>
    %c0_21 = arith.constant 0 : index
    %c0_22 = arith.constant 0 : index
    %41 = vector.load %arg4[%c0_21, %c0_22] : memref<128x128xbf16, #tpu.memory_space<vmem>>, vector<128x128xbf16>
    %cst_23 = arith.constant dense<0.000000e+00> : vector<32x128xf32>
    %42 = tpu.matmul %40, %41, %cst_23 {dimension_numbers = #tpu.dot_dimension_numbers<[1], [0], [0], [1], [0, 0, 1, 1], [], []>} : vector<32x128xbf16>, vector<128x128xbf16>, vector<32x128xf32> -> vector<32x128xf32>
    %c0_24 = arith.constant 0 : index
    %c0_25 = arith.constant 0 : index
    %43 = vector.load %arg5[%c0_24, %c0_25] : memref<1x128xf32, #tpu.memory_space<vmem>>, vector<1x128xf32>
    %44 = vector.broadcast %43 : vector<1x128xf32> to vector<32x128xf32>
    %45 = arith.addf %42, %44 : vector<32x128xf32>
    %c0_26 = arith.constant 0 : index
    %c0_27 = arith.constant 0 : index
    %46 = vector.load %arg6[%c0_26, %c0_27] : memref<32x128xf32, #tpu.memory_space<vmem>>, vector<32x128xf32>
    tpu.vector_store %arg6[%c0_26, %c0_27], %45 {strides = array<i32>} : memref<32x128xf32, #tpu.memory_space<vmem>>, vector<32x128xf32>,
    return
  }
  func.func @transform_0(%arg0: i32) -> (i32, i32, i32) {
    %c0_i32 = arith.constant 0 : i32
    %c0_i32_0 = arith.constant 0 : i32
    %c0_i32_1 = arith.constant 0 : i32
    return %c0_i32, %arg0, %c0_i32_0 : i32, i32, i32
  }
  func.func @transform_1(%arg0: i32) -> (i32, i32, i32) {
    %c0_i32 = arith.constant 0 : i32
    %c0_i32_0 = arith.constant 0 : i32
    %c0_i32_1 = arith.constant 0 : i32
    %c0_i32_2 = arith.constant 0 : i32
    return %c0_i32, %c0_i32_0, %c0_i32_1 : i32, i32, i32
  }
  func.func @transform_2(%arg0: i32) -> (i32, i32) {
    %c0_i32 = arith.constant 0 : i32
    %c0_i32_0 = arith.constant 0 : i32
    %c0_i32_1 = arith.constant 0 : i32
    return %c0_i32, %c0_i32_0 : i32, i32
  }
  func.func @transform_3(%arg0: i32) -> (i32, i32) {
    %c0_i32 = arith.constant 0 : i32
    %c0_i32_0 = arith.constant 0 : i32
    %c0_i32_1 = arith.constant 0 : i32
    return %c0_i32, %c0_i32_0 : i32, i32
  }
  func.func @transform_4(%arg0: i32) -> (i32, i32) {
    %c0_i32 = arith.constant 0 : i32
    %c0_i32_0 = arith.constant 0 : i32
    %c0_i32_1 = arith.constant 0 : i32
    return %c0_i32, %c0_i32_0 : i32, i32
  }
  func.func @transform_5(%arg0: i32) -> (i32, i32) {
    %c0_i32 = arith.constant 0 : i32
    %c0_i32_0 = arith.constant 0 : i32
    return %arg0, %c0_i32 : i32, i32
  }
}

</mosaic_0001>

<bundles_post_ra>
// kernel: tpu_custom_call.1
= control target key start
LH: loop header
LB: loop body
LE: loop exit
PB: predicated region body
PF: predicated region fallthrough
CT: control target
= control target key end

     0   :  { %v2465_v2 = vmov 0   ;;  %s3254_s0 = inlined_call_operand.vmem [shape: s32[3,256,1], index: 0, kind: input, shape index: {}]   ;;  %s3255_s1 = inlined_call_operand.vmem [shape: bf16[3,32,128], index: 1, kind: input, shape index: {}]   ;;  %s3256_s2 = inlined_call_operand.vmem [shape: f32[1,128], index: 2, kind: input, shape index: {}]   ;;  %s3257_s3 = inlined_call_operand.vmem [shape: bf16[128,128], index: 3, kind: input, shape index: {}]   ;;  %s3258_s4 = inlined_call_operand.vmem [shape: f32[1,128], index: 4, kind: input, shape index: {}]   ;;  %s3259_s5 = inlined_call_operand.hbm [shape: f32[32,128], index: 5, kind: output, shape index: {}]  }
   0x1   :  { %v2028_v0 = vld [vmem:[%s3254_s0 + $0x110] sm:$0xff]  ;;  %v2026_v1 = vld [vmem:[%s3254_s0 + $0x100] sm:$0xff]  ;;  %2428 = vset.pattern.permute.xlu1 %v2465_v2  ;;  %2427 = vset.pattern.permute.xlu0 %v2465_v2  ;;  %v2029_v3 = vld [vmem:[%s3254_s0 + $0x118] sm:$0xff] }
   0x2   :  { %308 = vperm.xlu1 %2428, %v2028_v0   ;;  %302 = vperm.xlu0 %2427, %v2026_v1   ;;  %v2027_v4 = vld [vmem:[%s3254_s0 + $0x108] sm:$0xff]  ;;  %v2030_v6 = vld [vmem:[%s3254_s0 + $0x120] sm:$0xff]  ;;  %v2033_v7 = vld [vmem:[%s3254_s0 + $0x138] sm:$0xff] }
   0x3   :  { %v2031_v5 = vld [vmem:[%s3254_s0 + $0x128] sm:$0xff]  ;;  %v2032_v8 = vld [vmem:[%s3254_s0 + $0x130] sm:$0xff]  ;;  %v2046_v10 = vld [vmem:[%s3254_s0 + $0x1a0] sm:$0xff] }
   0x4   :  { %v2047_v9 = vld [vmem:[%s3254_s0 + $0x1a8] sm:$0xff]  ;;  %v2049_v11 = vld [vmem:[%s3254_s0 + $0x1b8] sm:$0xff]  ;;  %v2048_v12 = vld [vmem:[%s3254_s0 + $0x1b0] sm:$0xff] }
   0x5   :  { %v2035_v13 = vld [vmem:[%s3254_s0 + $0x148] sm:$0xff]  ;;  %v2034_v14 = vld [vmem:[%s3254_s0 + $0x140] sm:$0xff]  ;;  %v2429_v15 = vld [vmem:[%s3255_s1 + $0x18] sm:$0xff]  }
   0x6   :  { %311 = vperm.xlu1 %2428, %v2029_v3   ;;  %305 = vperm.xlu0 %2427, %v2027_v4   ;;  %v2430_v16 = vld [vmem:[%s3255_s1 + $0x10] sm:$0xff]   ;;  %v2037_v17 = vld [vmem:[%s3254_s0 + $0x158] sm:$0xff]  ;;  %v2051_v19 = vld [vmem:[%s3254_s0 + $0x1c8] sm:$0xff] }
   0x7   :  { %2290 = vmatprep.subr.bf16.mxu0 %v2429_v15  ;;  %2418 = vmatprep.subr.bf16.mxu1 %v2429_v15  ;;  %v2036_v18 = vld [vmem:[%s3254_s0 + $0x150] sm:$0xff]  ;;  %v2050_v20 = vld [vmem:[%s3254_s0 + $0x1c0] sm:$0xff]  ;;  %v2053_v21 = vld [vmem:[%s3254_s0 + $0x1d8] sm:$0xff] }
   0x8   :  { %2291 = vmatpush3.bf16.msra.mxu0 %v2429_v15  ;;  %2420 = vmatpush3.bf16.msra.mxu1 %v2429_v15  ;;  %v2052_v22 = vld [vmem:[%s3254_s0 + $0x1d0] sm:$0xff] }
   0x9   :  { %2292 = vmatprep.subr.bf16.mxu0 %v2430_v16  ;;  %2419 = vmatprep.subr.bf16.mxu1 %v2430_v16 }
   0xa   :  { %317 = vperm.xlu1 %2428, %v2031_v5   ;;  %314 = vperm.xlu0 %2427, %v2030_v6  }
   0xc   :  { %2293 = vmatpush3.bf16.msra.mxu0 %v2430_v16  ;;  %2421 = vmatpush3.bf16.msra.mxu1 %v2430_v16 }
   0xe   :  { %323 = vperm.xlu1 %2428, %v2033_v7   ;;  %320 = vperm.xlu0 %2427, %v2032_v8  }
  0x12   :  { %365 = vperm.xlu1 %2428, %v2047_v9   ;;  %362 = vperm.xlu0 %2427, %v2046_v10  }
  0x16   :  { %371 = vperm.xlu1 %2428, %v2049_v11   ;;  %368 = vperm.xlu0 %2427, %v2048_v12  }
  0x1a   :  { %329 = vperm.xlu1 %2428, %v2035_v13   ;;  %326 = vperm.xlu0 %2427, %v2034_v14  }
  0x1e   :  { %335 = vperm.xlu1 %2428, %v2037_v17   ;;  %332 = vperm.xlu0 %2427, %v2036_v18  }
  0x22   :  { %377 = vperm.xlu1 %2428, %v2051_v19   ;;  %374 = vperm.xlu0 %2427, %v2050_v20  }
  0x23   :  { %10 = vsyncpa [#allocation3], 0  ;;  %v2039_v23 = vld [vmem:[%s3254_s0 + $0x168] sm:$0xff]  ;;  %v2038_v24 = vld [vmem:[%s3254_s0 + $0x160] sm:$0xff]  ;;  %v22_v3 = vlaneseq  ;;  %v2466_v13 = vmov 0.0   ;;  %vm526_vm4 = vcmask 261120  }
  0x24   :  { %v2041_v25 = vld [vmem:[%s3254_s0 + $0x178] sm:$0xff]  ;;  %v2040_v26 = vld [vmem:[%s3254_s0 + $0x170] sm:$0xff]  ;;  %v2055_v27 = vld [vmem:[%s3254_s0 + $0x1e8] sm:$0xff]  ;;  %s2467_s11 = smov [#allocation2]  }
  0x25   :  { %v2054_v28 = vld [vmem:[%s3254_s0 + $0x1e0] sm:$0xff]  ;;  %v2057_v29 = vld [vmem:[%s3254_s0 + $0x1f8] sm:$0xff]  ;;  %v2056_v30 = vld [vmem:[%s3254_s0 + $0x1f0] sm:$0xff]  ;;  %v2710_v6 = vand.u32 127, %v22_v3  ;;  %s1983_s12 = sshll.u32 %s2467_s11, 4  ;;  %s1984_s12 = int_to_ptr.vmem [resolvable:$true] %s1983_s12 }
  0x26   :  { %383 = vperm.xlu1 %2428, %v2053_v21   ;;  %380 = vperm.xlu0 %2427, %v2052_v22   ;;  %v2043_v31 = vld [vmem:[%s3254_s0 + $0x188] sm:$0xff]  ;;  %v2042_v32 = vld [vmem:[%s3254_s0 + $0x180] sm:$0xff]  ;;  %v2045_v33 = vld [vmem:[%s3254_s0 + $0x198] sm:$0xff]  ;;  %s2443_s13 = scalar_lea.vmem %s1984_s12, 512  ;;  %p2448_p1 = scmp.lt.s32.totalorder %s1984_s12, %s1984_s12 }
  0x27   :  { %v2044_v34 = vld [vmem:[%s3254_s0 + $0x190] sm:$0xff]  ;;  %v2605_v35 = vld [vmem:[%s3255_s1 + $0x8] sm:$0xff]   ;;  %v24_v37 = vld [vmem:[%s3254_s0] sm:$0xff]  ;;  %p2444_p0 = scmp.ne.s32.totalorder %s1984_s12, %s2443_s13  ;;  %p2449_p2 = scmp.lt.s32.totalorder %s2443_s13, %s2443_s13 }
  0x28   :  { %v25_v36 = vld [vmem:[%s3254_s0 + $0x8] sm:$0xff]  ;;  %2326 = vmatprep.subr.bf16.mxu1 %v2605_v35  ;;  %v27_v38 = vld [vmem:[%s3254_s0 + $0x18] sm:$0xff]  ;;  %v26_v39 = vld [vmem:[%s3254_s0 + $0x10] sm:$0xff] }
  0x29   :  { %v2623_v40 = vld [vmem:[%s3255_s1 + $0x28] sm:$0xff]   ;;  %v2130_v42 = vld [vmem:[%s3254_s0 + $0x200] sm:$0xff]  ;;  %v2133_v43 = vld [vmem:[%s3254_s0 + $0x218] sm:$0xff]  ;;  %p2450_p3 = por %p2449_p2, %p2448_p1 }
  0x2a   :  { %341 = vperm.xlu1 %2428, %v2039_v23   ;;  %338 = vperm.xlu0 %2427, %v2038_v24   ;;  %v2131_v41 = vld [vmem:[%s3254_s0 + $0x208] sm:$0xff]  ;;  %v2132_v44 = vld [vmem:[%s3254_s0 + $0x210] sm:$0xff]  ;;  %v28_v46 = vld [vmem:[%s3254_s0 + $0x20] sm:$0xff] }
  0x2b   :  { %2362 = vmatprep.subr.bf16.mxu0 %v2623_v40  ;;  %v29_v45 = vld [vmem:[%s3254_s0 + $0x28] sm:$0xff]  ;;  %v31_v47 = vld [vmem:[%s3254_s0 + $0x38] sm:$0xff]  ;;  %v30_v48 = vld [vmem:[%s3254_s0 + $0x30] sm:$0xff]  ;;  %p2451_p4 = pnand %p2450_p3, %p2444_p0 }
  0x2c   :  { %v2135_v49 = vld [vmem:[%s3254_s0 + $0x228] sm:$0xff]  ;;  %v2134_v50 = vld [vmem:[%s3254_s0 + $0x220] sm:$0xff]  ;;  %v2137_v51 = vld [vmem:[%s3254_s0 + $0x238] sm:$0xff] }
  0x2d   :  { %v2136_v52 = vld [vmem:[%s3254_s0 + $0x230] sm:$0xff]  ;;  %v33_v53 = vld [vmem:[%s3254_s0 + $0x48] sm:$0xff]  ;;  %v32_v54 = vld [vmem:[%s3254_s0 + $0x40] sm:$0xff] }
  0x2e   :  { %347 = vperm.xlu1 %2428, %v2041_v25   ;;  %344 = vperm.xlu0 %2427, %v2040_v26   ;;  %v35_v55 = vld [vmem:[%s3254_s0 + $0x58] sm:$0xff]  ;;  %v34_v56 = vld [vmem:[%s3254_s0 + $0x50] sm:$0xff]  ;;  %v2139_v57 = vld [vmem:[%s3254_s0 + $0x248] sm:$0xff] }
  0x2f   :  { %v2138_v58 = vld [vmem:[%s3254_s0 + $0x240] sm:$0xff]  ;;  %v2141_v59 = vld [vmem:[%s3254_s0 + $0x258] sm:$0xff]  ;;  %v2140_v60 = vld [vmem:[%s3254_s0 + $0x250] sm:$0xff] }
  0x30   :  { %v37_v61 = vld [vmem:[%s3254_s0 + $0x68] sm:$0xff]  ;;  %v36_v62 = vld [vmem:[%s3254_s0 + $0x60] sm:$0xff]  ;;  %v39_v63 = vld [vmem:[%s3254_s0 + $0x78] sm:$0xff] }
  0x31   :  { %v38_v0 = vld [vmem:[%s3254_s0 + $0x70] sm:$0xff]  ;;  %v2143_v1 = vld [vmem:[%s3254_s0 + $0x268] sm:$0xff]  ;;  %v2142_v2 = vld [vmem:[%s3254_s0 + $0x260] sm:$0xff] }
  0x32   :  { %389 = vperm.xlu1 %2428, %v2055_v27   ;;  %386 = vperm.xlu0 %2427, %v2054_v28   ;;  %v2145_v4 = vld [vmem:[%s3254_s0 + $0x278] sm:$0xff]  ;;  %v2144_v5 = vld [vmem:[%s3254_s0 + $0x270] sm:$0xff]  ;;  %v41_v9 = vld [vmem:[%s3254_s0 + $0x88] sm:$0xff] }
  0x33   :  { %v40_v10 = vld [vmem:[%s3254_s0 + $0x80] sm:$0xff]  ;;  %v43_v18 = vld [vmem:[%s3254_s0 + $0x98] sm:$0xff]  ;;  %v42_v19 = vld [vmem:[%s3254_s0 + $0x90] sm:$0xff] }
  0x34   :  { %v2147_v26 = vld [vmem:[%s3254_s0 + $0x288] sm:$0xff]  ;;  %v2146_v27 = vld [vmem:[%s3254_s0 + $0x280] sm:$0xff] }
  0x35   :  { %v2434_v28 = vld [vmem:[%s3255_s1 + $0x20] sm:$0xff]  }
  0x36   :  { %395 = vperm.xlu1 %2428, %v2057_v29   ;;  %392 = vperm.xlu0 %2427, %v2056_v30  }
  0x3a   :  { %353 = vperm.xlu1 %2428, %v2043_v31   ;;  %350 = vperm.xlu0 %2427, %v2042_v32  }
  0x3e   :  { %359 = vperm.xlu1 %2428, %v2045_v33   ;;  %356 = vperm.xlu0 %2427, %v2044_v34   ;;  %v2149_v34 = vld [vmem:[%s3254_s0 + $0x298] sm:$0xff] }
  0x42   :  { %60 = vperm.xlu1 %2428, %v25_v36   ;;  %57 = vperm.xlu0 %2427, %v24_v37   ;;  %v2148_v36 = vld [vmem:[%s3254_s0 + $0x290] sm:$0xff] }
  0x46   :  { %66 = vperm.xlu1 %2428, %v27_v38   ;;  %63 = vperm.xlu0 %2427, %v26_v39  }
  0x4a   :  { %994 = vperm.xlu1 %2428, %v2131_v41   ;;  %991 = vperm.xlu0 %2427, %v2130_v42   ;;  %v45_v42 = vld [vmem:[%s3254_s0 + $0xa8] sm:$0xff] }
  0x4e   :  { %1000 = vperm.xlu1 %2428, %v2133_v43   ;;  %997 = vperm.xlu0 %2427, %v2132_v44   ;;  %v44_v43 = vld [vmem:[%s3254_s0 + $0xa0] sm:$0xff] }
  0x52   :  { %72 = vperm.xlu1 %2428, %v29_v45   ;;  %69 = vperm.xlu0 %2427, %v28_v46  }
  0x56   :  { %78 = vperm.xlu1 %2428, %v31_v47   ;;  %75 = vperm.xlu0 %2427, %v30_v48  }
  0x5a   :  { %1006 = vperm.xlu1 %2428, %v2135_v49   ;;  %1003 = vperm.xlu0 %2427, %v2134_v50   ;;  %v47_v49 = vld [vmem:[%s3254_s0 + $0xb8] sm:$0xff]  ;;  %v46_v50 = vld [vmem:[%s3254_s0 + $0xb0] sm:$0xff] }
  0x5e   :  { %1012 = vperm.xlu1 %2428, %v2137_v51   ;;  %1009 = vperm.xlu0 %2427, %v2136_v52  }
  0x62   :  { %84 = vperm.xlu1 %2428, %v33_v53   ;;  %81 = vperm.xlu0 %2427, %v32_v54   ;;  %v2432_v54 = vld [vmem:[%s3255_s1] sm:$0xff]  }
  0x66   :  { %90 = vperm.xlu1 %2428, %v35_v55   ;;  %87 = vperm.xlu0 %2427, %v34_v56  }
  0x6a   :  { %1018 = vperm.xlu1 %2428, %v2139_v57   ;;  %1015 = vperm.xlu0 %2427, %v2138_v58   ;;  %v2151_v57 = vld [vmem:[%s3254_s0 + $0x2a8] sm:$0xff]  ;;  %v2150_v58 = vld [vmem:[%s3254_s0 + $0x2a0] sm:$0xff] }
  0x6e   :  { %1024 = vperm.xlu1 %2428, %v2141_v59   ;;  %1021 = vperm.xlu0 %2427, %v2140_v60  }
  0x72   :  { %96 = vperm.xlu1 %2428, %v37_v61   ;;  %93 = vperm.xlu0 %2427, %v36_v62  }
  0x76   :  { %102 = vperm.xlu1 %2428, %v39_v63   ;;  %99 = vperm.xlu0 %2427, %v38_v0   ;;  %v2153_v0 = vld [vmem:[%s3254_s0 + $0x2b8] sm:$0xff] }
  0x7a   :  { %1030 = vperm.xlu1 %2428, %v2143_v1   ;;  %1027 = vperm.xlu0 %2427, %v2142_v2  }
  0x7d   :  { %v309_v7 = vpop.permute.xlu1 %308  ;;  %v303_v8 = vpop.permute.xlu0 %302 }
  0x7e   :  { %1036 = vperm.xlu1 %2428, %v2145_v4   ;;  %1033 = vperm.xlu0 %2427, %v2144_v5   ;;  %vm399_vm0 = vcmp.eq.s32.totalorder %v309_v7, %v2710_v6  ;;  %vm397_vm1 = vcmp.eq.s32.totalorder %v303_v8, %v2710_v6  ;;  %v49_v7 = vld [vmem:[%s3254_s0 + $0xc8] sm:$0xff]  ;;  %v48_v8 = vld [vmem:[%s3254_s0 + $0xc0] sm:$0xff] }
  0x7f   :  { %v2060_v14 = vsel %vm399_vm0, 1.0, %v2466_v13  ;;  %v2058_v15 = vsel %vm397_vm1, 1.0, %v2466_v13 }
  0x81   :  { %v312_v11 = vpop.permute.xlu1 %311  ;;  %v306_v12 = vpop.permute.xlu0 %305 }
  0x82   :  { %vm400_vm2 = vcmp.eq.s32.totalorder %v312_v11, %v2710_v6  ;;  %vm398_vm3 = vcmp.eq.s32.totalorder %v306_v12, %v2710_v6  ;;  %108 = vperm.xlu1 %2428, %v41_v9   ;;  %105 = vperm.xlu0 %2427, %v40_v10  }
  0x83   :  { %v2061_v16 = vsel %vm400_vm2, 1.0, %v2466_v13  ;;  %v2059_v17 = vsel %vm398_vm3, 1.0, %v2466_v13 }
  0x84   :  { %v494_v20 = vpack.c.bf16 %v2061_v16, %v2060_v14  ;;  %v493_v21 = vpack.c.bf16 %v2059_v17, %v2058_v15  ;;  %v51_v15 = vld [vmem:[%s3254_s0 + $0xd8] sm:$0xff]  ;;  %v50_v16 = vld [vmem:[%s3254_s0 + $0xd0] sm:$0xff] }
  0x85   :  { %v318_v22 = vpop.permute.xlu1 %317  ;;  %v315_v23 = vpop.permute.xlu0 %314 }
  0x86   :  { %vm402_vm5 = vcmp.eq.s32.totalorder %v318_v22, %v2710_v6  ;;  %vm401_vm6 = vcmp.eq.s32.totalorder %v315_v23, %v2710_v6  ;;  %114 = vperm.xlu1 %2428, %v43_v18   ;;  %111 = vperm.xlu0 %2427, %v42_v19   ;;  %v2155_v22 = vld [vmem:[%s3254_s0 + $0x2c8] sm:$0xff]  ;;  %v2154_v23 = vld [vmem:[%s3254_s0 + $0x2c0] sm:$0xff] }
  0x87   :  { %v2063_v24 = vsel %vm402_vm5, 1.0, %v2466_v13  ;;  %v2062_v25 = vsel %vm401_vm6, 1.0, %v2466_v13  ;;  %2294 = vmatprep.mubr.msk.bf16.mxu0 %vm526_vm4, %v493_v21 }
  0x88   :  { %v495_v29 = vpack.c.bf16 %v2063_v24, %v2062_v25  ;;  %2295 = vmatmul.mubr.msk.bf16.vlgmr.msra.gmra.mxu0 %vm526_vm4, %v494_v20 }
  0x89   :  { %v324_v30 = vpop.permute.xlu1 %323  ;;  %v321_v31 = vpop.permute.xlu0 %320  ;;  %2363 = vmatpush3.bf16.msra.mxu0 %v2623_v40 }
  0x8a   :  { %vm404_vm7 = vcmp.eq.s32.totalorder %v324_v30, %v2710_v6  ;;  %vm403_vm8 = vcmp.eq.s32.totalorder %v321_v31, %v2710_v6  ;;  %1042 = vperm.xlu1 %2428, %v2147_v26   ;;  %1039 = vperm.xlu0 %2427, %v2146_v27   ;;  %v2156_v30 = vld [vmem:[%s3254_s0 + $0x2d0] sm:$0xff] }
  0x8b   :  { %v2065_v32 = vsel %vm404_vm7, 1.0, %v2466_v13  ;;  %v2064_v33 = vsel %vm403_vm8, 1.0, %v2466_v13  ;;  %2298 = vmatprep.mubr.msk.bf16.mxu0 %vm526_vm4, %v495_v29  ;;  %2364 = vmatprep.subr.bf16.mxu0 %v2434_v28  ;;  %v2157_v29 = vld [vmem:[%s3254_s0 + $0x2d8] sm:$0xff] }
  0x8c   :  { %v496_v37 = vpack.c.bf16 %v2065_v32, %v2064_v33 }
  0x8d   :  { %v366_v38 = vpop.permute.xlu1 %365  ;;  %v363_v39 = vpop.permute.xlu0 %362  ;;  %2365 = vmatpush3.bf16.msra.mxu0 %v2434_v28 }
  0x8e   :  { %vm418_vm9 = vcmp.eq.s32.totalorder %v366_v38, %v2710_v6  ;;  %vm417_vm10 = vcmp.eq.s32.totalorder %v363_v39, %v2710_v6  ;;  %1048 = vperm.xlu1 %2428, %v2149_v34   ;;  %1045 = vperm.xlu0 %2427, %v2148_v36   ;;  %v52_v38 = vld [vmem:[%s3254_s0 + $0xe0] sm:$0xff] }
  0x8f   :  { %v2079_v40 = vsel %vm418_vm9, 1.0, %v2466_v13  ;;  %v2078_v41 = vsel %vm417_vm10, 1.0, %v2466_v13 }
  0x90   :  { %2299 = vmatmul.mubr.msk.bf16.gmra.mxu0 %vm526_vm4, %v496_v37  ;;  %v503_v44 = vpack.c.bf16 %v2079_v40, %v2078_v41  ;;  %v53_v37 = vld [vmem:[%s3254_s0 + $0xe8] sm:$0xff] }
  0x91   :  { %v372_v45 = vpop.permute.xlu1 %371  ;;  %v369_v46 = vpop.permute.xlu0 %368 }
  0x92   :  { %vm420_vm11 = vcmp.eq.s32.totalorder %v372_v45, %v2710_v6  ;;  %vm419_vm12 = vcmp.eq.s32.totalorder %v369_v46, %v2710_v6  ;;  %120 = vperm.xlu1 %2428, %v45_v42   ;;  %117 = vperm.xlu0 %2427, %v44_v43   ;;  %v54_v45 = vld [vmem:[%s3254_s0 + $0xf0] sm:$0xff] }
  0x93   :  { %v2081_v47 = vsel %vm420_vm11, 1.0, %v2466_v13  ;;  %v2080_v48 = vsel %vm419_vm12, 1.0, %v2466_v13  ;;  %2314 = vmatprep.mubr.msk.bf16.mxu1 %vm526_vm4, %v503_v44  ;;  %v55_v44 = vld [vmem:[%s3254_s0 + $0xf8] sm:$0xff] }
  0x94   :  { %v504_v51 = vpack.c.bf16 %v2081_v47, %v2080_v48 }
  0x95   :  { %v330_v52 = vpop.permute.xlu1 %329  ;;  %v327_v53 = vpop.permute.xlu0 %326 }
  0x96   :  { %vm406_vm13 = vcmp.eq.s32.totalorder %v330_v52, %v2710_v6  ;;  %vm405_vm14 = vcmp.eq.s32.totalorder %v327_v53, %v2710_v6  ;;  %126 = vperm.xlu1 %2428, %v47_v49   ;;  %123 = vperm.xlu0 %2427, %v46_v50   ;;  %v2158_v52 = vld [vmem:[%s3254_s0 + $0x2e0] sm:$0xff] }
  0x97   :  { %v2067_v55 = vsel %vm406_vm13, 1.0, %v2466_v13  ;;  %v2066_v56 = vsel %vm405_vm14, 1.0, %v2466_v13  ;;  %2315 = vmatmul.mubr.msk.bf16.vlgmr.msra.gmra.mxu1 %vm526_vm4, %v504_v51  ;;  %v2159_v51 = vld [vmem:[%s3254_s0 + $0x2e8] sm:$0xff] }
  0x98   :  { %v497_v59 = vpack.c.bf16 %v2067_v55, %v2066_v56  ;;  %2327 = vmatpush3.bf16.msra.mxu1 %v2605_v35  ;;  %v2152_v35 = vld [vmem:[%s3254_s0 + $0x2b0] sm:$0xff] }
  0x99   :  { %v336_v60 = vpop.permute.xlu1 %335  ;;  %v333_v61 = vpop.permute.xlu0 %332  ;;  %2328 = vmatprep.subr.bf16.mxu1 %v2432_v54 }
  0x9a   :  { %vm408_vm15 = vcmp.eq.s32.totalorder %v336_v60, %v2710_v6  ;;  %vm407_vm0 = vcmp.eq.s32.totalorder %v333_v61, %v2710_v6  ;;  %1054 = vperm.xlu1 %2428, %v2151_v57   ;;  %1051 = vperm.xlu0 %2427, %v2150_v58   ;;  %v2161_v58 = vld [vmem:[%s3254_s0 + $0x2f8] sm:$0xff] }
  0x9b   :  { %v2069_v62 = vsel %vm408_vm15, 1.0, %v2466_v13  ;;  %v2068_v63 = vsel %vm407_vm0, 1.0, %v2466_v13  ;;  %2302 = vmatprep.mubr.msk.bf16.mxu0 %vm526_vm4, %v497_v59  ;;  %v2160_v59 = vld [vmem:[%s3254_s0 + $0x2f0] sm:$0xff] }
  0x9c   :  { %v498_v1 = vpack.c.bf16 %v2069_v62, %v2068_v63  ;;  %2329 = vmatpush3.bf16.msra.mxu1 %v2432_v54 }
  0x9d   :  { %v378_v2 = vpop.permute.xlu1 %377  ;;  %v375_v3 = vpop.permute.xlu0 %374 }
  0x9e   :  { %vm422_vm1 = vcmp.eq.s32.totalorder %v378_v2, %v2710_v6  ;;  %vm421_vm2 = vcmp.eq.s32.totalorder %v375_v3, %v2710_v6  ;;  %1060 = vperm.xlu1 %2428, %v2153_v0   ;;  %1057 = vperm.xlu0 %2427, %v2152_v35  }
  0x9f   :  { %v2083_v4 = vsel %vm422_vm1, 1.0, %v2466_v13  ;;  %v2082_v5 = vsel %vm421_vm2, 1.0, %v2466_v13  ;;  %2303 = vmatmul.mubr.msk.bf16.gmra.mxu0 %vm526_vm4, %v498_v1 }
  0xa0   :  { %v505_v9 = vpack.c.bf16 %v2083_v4, %v2082_v5 }
  0xa1   :  { %v384_v10 = vpop.permute.xlu1 %383  ;;  %v381_v11 = vpop.permute.xlu0 %380 }
  0xa2   :  { %vm424_vm3 = vcmp.eq.s32.totalorder %v384_v10, %v2710_v6  ;;  %vm423_vm5 = vcmp.eq.s32.totalorder %v381_v11, %v2710_v6  ;;  %132 = vperm.xlu1 %2428, %v49_v7   ;;  %129 = vperm.xlu0 %2427, %v48_v8  }
  0xa3   :  { %v2085_v12 = vsel %vm424_vm3, 1.0, %v2466_v13  ;;  %v2084_v14 = vsel %vm423_vm5, 1.0, %v2466_v13  ;;  %2318 = vmatprep.mubr.msk.bf16.mxu1 %vm526_vm4, %v505_v9 }
  0xa4   :  { %v506_v17 = vpack.c.bf16 %v2085_v12, %v2084_v14 }
  0xa5   :  { %v342_v18 = vpop.permute.xlu1 %341  ;;  %v339_v19 = vpop.permute.xlu0 %338 }
  0xa6   :  { %vm410_vm6 = vcmp.eq.s32.totalorder %v342_v18, %v2710_v6  ;;  %vm409_vm7 = vcmp.eq.s32.totalorder %v339_v19, %v2710_v6  ;;  %138 = vperm.xlu1 %2428, %v51_v15   ;;  %135 = vperm.xlu0 %2427, %v50_v16  }
  0xa7   :  { %v2071_v20 = vsel %vm410_vm6, 1.0, %v2466_v13  ;;  %v2070_v21 = vsel %vm409_vm7, 1.0, %v2466_v13  ;;  %2319 = vmatmul.mubr.msk.bf16.gmra.mxu1 %vm526_vm4, %v506_v17 }
  0xa8   :  { %v499_v24 = vpack.c.bf16 %v2071_v20, %v2070_v21 }
  0xa9   :  { %v348_v25 = vpop.permute.xlu1 %347  ;;  %v345_v26 = vpop.permute.xlu0 %344 }
  0xaa   :  { %vm412_vm8 = vcmp.eq.s32.totalorder %v348_v25, %v2710_v6  ;;  %vm411_vm9 = vcmp.eq.s32.totalorder %v345_v26, %v2710_v6  ;;  %1066 = vperm.xlu1 %2428, %v2155_v22   ;;  %1063 = vperm.xlu0 %2427, %v2154_v23  }
  0xab   :  { %v2073_v27 = vsel %vm412_vm8, 1.0, %v2466_v13  ;;  %v2072_v28 = vsel %vm411_vm9, 1.0, %v2466_v13  ;;  %2306 = vmatprep.mubr.msk.bf16.mxu0 %vm526_vm4, %v499_v24 }
  0xac   :  { %v500_v31 = vpack.c.bf16 %v2073_v27, %v2072_v28 }
  0xad   :  { %v390_v32 = vpop.permute.xlu1 %389  ;;  %v387_v33 = vpop.permute.xlu0 %386 }
  0xae   :  { %vm426_vm10 = vcmp.eq.s32.totalorder %v390_v32, %v2710_v6  ;;  %vm425_vm11 = vcmp.eq.s32.totalorder %v387_v33, %v2710_v6  ;;  %1072 = vperm.xlu1 %2428, %v2157_v29   ;;  %1069 = vperm.xlu0 %2427, %v2156_v30  }
  0xaf   :  { %v2087_v34 = vsel %vm426_vm10, 1.0, %v2466_v13  ;;  %v2086_v36 = vsel %vm425_vm11, 1.0, %v2466_v13  ;;  %2307 = vmatmul.mubr.msk.bf16.gmra.mxu0 %vm526_vm4, %v500_v31 }
  0xb0   :  { %v507_v39 = vpack.c.bf16 %v2087_v34, %v2086_v36 }
  0xb1   :  { %v396_v40 = vpop.permute.xlu1 %395  ;;  %v393_v41 = vpop.permute.xlu0 %392 }
  0xb2   :  { %vm428_vm12 = vcmp.eq.s32.totalorder %v396_v40, %v2710_v6  ;;  %vm427_vm13 = vcmp.eq.s32.totalorder %v393_v41, %v2710_v6  ;;  %144 = vperm.xlu1 %2428, %v53_v37   ;;  %141 = vperm.xlu0 %2427, %v52_v38  }
  0xb3   :  { %v2089_v42 = vsel %vm428_vm12, 1.0, %v2466_v13  ;;  %v2088_v43 = vsel %vm427_vm13, 1.0, %v2466_v13  ;;  %2322 = vmatprep.mubr.msk.bf16.mxu1 %vm526_vm4, %v507_v39 }
  0xb4   :  { %v508_v46 = vpack.c.bf16 %v2089_v42, %v2088_v43 }
  0xb5   :  { %v354_v47 = vpop.permute.xlu1 %353  ;;  %v351_v48 = vpop.permute.xlu0 %350 }
  0xb6   :  { %vm414_vm14 = vcmp.eq.s32.totalorder %v354_v47, %v2710_v6  ;;  %vm413_vm15 = vcmp.eq.s32.totalorder %v351_v48, %v2710_v6  ;;  %150 = vperm.xlu1 %2428, %v55_v44   ;;  %147 = vperm.xlu0 %2427, %v54_v45  }
  0xb7   :  { %v2075_v49 = vsel %vm414_vm14, 1.0, %v2466_v13  ;;  %v2074_v50 = vsel %vm413_vm15, 1.0, %v2466_v13  ;;  %2323 = vmatmul.mubr.msk.bf16.gmra.mxu1 %vm526_vm4, %v508_v46 }
  0xb8   :  { %v501_v53 = vpack.c.bf16 %v2075_v49, %v2074_v50 }
  0xb9   :  { %v360_v54 = vpop.permute.xlu1 %359  ;;  %v357_v55 = vpop.permute.xlu0 %356 }
  0xba   :  { %vm416_vm0 = vcmp.eq.s32.totalorder %v360_v54, %v2710_v6  ;;  %vm415_vm1 = vcmp.eq.s32.totalorder %v357_v55, %v2710_v6  ;;  %1078 = vperm.xlu1 %2428, %v2159_v51   ;;  %1075 = vperm.xlu0 %2427, %v2158_v52  }
  0xbb   :  { %v2077_v56 = vsel %vm416_vm0, 1.0, %v2466_v13  ;;  %v2076_v57 = vsel %vm415_vm1, 1.0, %v2466_v13  ;;  %2310 = vmatprep.mubr.msk.bf16.mxu0 %vm526_vm4, %v501_v53 }
  0xbc   :  { %v502_v60 = vpack.c.bf16 %v2077_v56, %v2076_v57 }
  0xbd   :  { %v61_v61 = vpop.permute.xlu1 %60  ;;  %v58_v62 = vpop.permute.xlu0 %57 }
  0xbe   :  { %vm153_vm2 = vcmp.eq.s32.totalorder %v61_v61, %v2710_v6  ;;  %vm152_vm3 = vcmp.eq.s32.totalorder %v58_v62, %v2710_v6  ;;  %1084 = vperm.xlu1 %2428, %v2161_v58   ;;  %1081 = vperm.xlu0 %2427, %v2160_v59  }
  0xbf   :  { %v1995_v63 = vsel %vm153_vm2, 1.0, %v2466_v13  ;;  %v1994_v0 = vsel %vm152_vm3, 1.0, %v2466_v13  ;;  %2311 = vmatmul.mubr.msk.bf16.gmra.mxu0 %vm526_vm4, %v502_v60 }
  0xc0   :  { %v248_v35 = vpack.c.bf16 %v1995_v63, %v1994_v0 }
  0xc1   :  { %v67_v1 = vpop.permute.xlu1 %66  ;;  %v64_v2 = vpop.permute.xlu0 %63 }
  0xc2   :  { %vm155_vm5 = vcmp.eq.s32.totalorder %v67_v1, %v2710_v6  ;;  %vm154_vm6 = vcmp.eq.s32.totalorder %v64_v2, %v2710_v6  ;;  %2330 = vmatprep.mubr.msk.bf16.mxu1 %vm526_vm4, %v248_v35 }
  0xc3   :  { %v1997_v3 = vsel %vm155_vm5, 1.0, %v2466_v13  ;;  %v1996_v4 = vsel %vm154_vm6, 1.0, %v2466_v13 }
  0xc4   :  { %v249_v5 = vpack.c.bf16 %v1997_v3, %v1996_v4 }
  0xc5   :  { %v995_v7 = vpop.permute.xlu1 %994  ;;  %v992_v8 = vpop.permute.xlu0 %991 }
  0xc6   :  { %vm1087_vm7 = vcmp.eq.s32.totalorder %v995_v7, %v2710_v6  ;;  %vm1086_vm8 = vcmp.eq.s32.totalorder %v992_v8, %v2710_v6  ;;  %2331 = vmatmul.mubr.msk.bf16.vlgmr.msra.gmra.mxu1 %vm526_vm4, %v249_v5 }
  0xc7   :  { %v2163_v9 = vsel %vm1087_vm7, 1.0, %v2466_v13  ;;  %v2162_v10 = vsel %vm1086_vm8, 1.0, %v2466_v13 }
  0xc8   :  { %v1182_v11 = vpack.c.bf16 %v2163_v9, %v2162_v10 }
  0xc9   :  { %v1001_v12 = vpop.permute.xlu1 %1000  ;;  %v998_v14 = vpop.permute.xlu0 %997 }
  0xca   :  { %vm1089_vm9 = vcmp.eq.s32.totalorder %v1001_v12, %v2710_v6  ;;  %vm1088_vm10 = vcmp.eq.s32.totalorder %v998_v14, %v2710_v6  ;;  %2366 = vmatprep.mubr.msk.bf16.mxu0 %vm526_vm4, %v1182_v11 }
  0xcb   :  { %v2165_v15 = vsel %vm1089_vm9, 1.0, %v2466_v13  ;;  %v2164_v16 = vsel %vm1088_vm10, 1.0, %v2466_v13 }
  0xcc   :  { %v1183_v17 = vpack.c.bf16 %v2165_v15, %v2164_v16 }
  0xcd   :  { %v73_v18 = vpop.permute.xlu1 %72  ;;  %v70_v19 = vpop.permute.xlu0 %69 }
  0xce   :  { %vm157_vm11 = vcmp.eq.s32.totalorder %v73_v18, %v2710_v6  ;;  %vm156_vm12 = vcmp.eq.s32.totalorder %v70_v19, %v2710_v6  ;;  %2367 = vmatmul.mubr.msk.bf16.vlgmr.msra.gmra.mxu0 %vm526_vm4, %v1183_v17 }
  0xcf   :  { %v1999_v20 = vsel %vm157_vm11, 1.0, %v2466_v13  ;;  %v1998_v21 = vsel %vm156_vm12, 1.0, %v2466_v13 }
  0xd0   :  { %v250_v22 = vpack.c.bf16 %v1999_v20, %v1998_v21 }
  0xd1   :  { %v79_v23 = vpop.permute.xlu1 %78  ;;  %v76_v24 = vpop.permute.xlu0 %75 }
  0xd2   :  { %vm159_vm13 = vcmp.eq.s32.totalorder %v79_v23, %v2710_v6  ;;  %vm158_vm14 = vcmp.eq.s32.totalorder %v76_v24, %v2710_v6  ;;  %2334 = vmatprep.mubr.msk.bf16.mxu1 %vm526_vm4, %v250_v22 }
  0xd3   :  { %v2001_v25 = vsel %vm159_vm13, 1.0, %v2466_v13  ;;  %v2000_v26 = vsel %vm158_vm14, 1.0, %v2466_v13 }
  0xd4   :  { %v251_v27 = vpack.c.bf16 %v2001_v25, %v2000_v26 }
  0xd5   :  { %v1007_v28 = vpop.permute.xlu1 %1006  ;;  %v1004_v29 = vpop.permute.xlu0 %1003 }
  0xd6   :  { %vm1091_vm15 = vcmp.eq.s32.totalorder %v1007_v28, %v2710_v6  ;;  %vm1090_vm0 = vcmp.eq.s32.totalorder %v1004_v29, %v2710_v6  ;;  %2335 = vmatmul.mubr.msk.bf16.gmra.mxu1 %vm526_vm4, %v251_v27 }
  0xd7   :  { %v2167_v30 = vsel %vm1091_vm15, 1.0, %v2466_v13  ;;  %v2166_v31 = vsel %vm1090_vm0, 1.0, %v2466_v13 }
  0xd8   :  { %v1184_v32 = vpack.c.bf16 %v2167_v30, %v2166_v31 }
  0xd9   :  { %v1013_v33 = vpop.permute.xlu1 %1012  ;;  %v1010_v34 = vpop.permute.xlu0 %1009 }
  0xda   :  { %vm1093_vm1 = vcmp.eq.s32.totalorder %v1013_v33, %v2710_v6  ;;  %vm1092_vm2 = vcmp.eq.s32.totalorder %v1010_v34, %v2710_v6  ;;  %2370 = vmatprep.mubr.msk.bf16.mxu0 %vm526_vm4, %v1184_v32 }
  0xdb   :  { %v2169_v36 = vsel %vm1093_vm1, 1.0, %v2466_v13  ;;  %v2168_v37 = vsel %vm1092_vm2, 1.0, %v2466_v13 }
  0xdc   :  { %v1185_v38 = vpack.c.bf16 %v2169_v36, %v2168_v37 }
  0xdd   :  { %v85_v39 = vpop.permute.xlu1 %84  ;;  %v82_v40 = vpop.permute.xlu0 %81 }
  0xde   :  { %vm161_vm3 = vcmp.eq.s32.totalorder %v85_v39, %v2710_v6  ;;  %vm160_vm5 = vcmp.eq.s32.totalorder %v82_v40, %v2710_v6  ;;  %2371 = vmatmul.mubr.msk.bf16.gmra.mxu0 %vm526_vm4, %v1185_v38 }
  0xdf   :  { %v2003_v41 = vsel %vm161_vm3, 1.0, %v2466_v13  ;;  %v2002_v42 = vsel %vm160_vm5, 1.0, %v2466_v13 }
  0xe0   :  { %v252_v43 = vpack.c.bf16 %v2003_v41, %v2002_v42 }
  0xe1   :  { %v91_v44 = vpop.permute.xlu1 %90  ;;  %v88_v45 = vpop.permute.xlu0 %87 }
  0xe2   :  { %vm163_vm6 = vcmp.eq.s32.totalorder %v91_v44, %v2710_v6  ;;  %vm162_vm7 = vcmp.eq.s32.totalorder %v88_v45, %v2710_v6  ;;  %2338 = vmatprep.mubr.msk.bf16.mxu1 %vm526_vm4, %v252_v43 }
  0xe3   :  { %v2005_v46 = vsel %vm163_vm6, 1.0, %v2466_v13  ;;  %v2004_v47 = vsel %vm162_vm7, 1.0, %v2466_v13 }
  0xe4   :  { %v253_v48 = vpack.c.bf16 %v2005_v46, %v2004_v47 }
  0xe5   :  { %v1019_v49 = vpop.permute.xlu1 %1018  ;;  %v1016_v50 = vpop.permute.xlu0 %1015 }
  0xe6   :  { %vm1095_vm8 = vcmp.eq.s32.totalorder %v1019_v49, %v2710_v6  ;;  %vm1094_vm9 = vcmp.eq.s32.totalorder %v1016_v50, %v2710_v6  ;;  %2339 = vmatmul.mubr.msk.bf16.gmra.mxu1 %vm526_vm4, %v253_v48 }
  0xe7   :  { %v2171_v51 = vsel %vm1095_vm8, 1.0, %v2466_v13  ;;  %v2170_v52 = vsel %vm1094_vm9, 1.0, %v2466_v13 }
  0xe8   :  { %v1186_v53 = vpack.c.bf16 %v2171_v51, %v2170_v52 }
  0xe9   :  { %v1025_v54 = vpop.permute.xlu1 %1024  ;;  %v1022_v55 = vpop.permute.xlu0 %1021 }
  0xea   :  { %vm1097_vm10 = vcmp.eq.s32.totalorder %v1025_v54, %v2710_v6  ;;  %vm1096_vm11 = vcmp.eq.s32.totalorder %v1022_v55, %v2710_v6  ;;  %2374 = vmatprep.mubr.msk.bf16.mxu0 %vm526_vm4, %v1186_v53 }
  0xeb   :  { %v2173_v56 = vsel %vm1097_vm10, 1.0, %v2466_v13  ;;  %v2172_v57 = vsel %vm1096_vm11, 1.0, %v2466_v13 }
  0xec   :  { %v1187_v58 = vpack.c.bf16 %v2173_v56, %v2172_v57 }
  0xed   :  { %v97_v59 = vpop.permute.xlu1 %96  ;;  %v94_v60 = vpop.permute.xlu0 %93 }
  0xee   :  { %vm165_vm12 = vcmp.eq.s32.totalorder %v97_v59, %v2710_v6  ;;  %vm164_vm13 = vcmp.eq.s32.totalorder %v94_v60, %v2710_v6  ;;  %2375 = vmatmul.mubr.msk.bf16.gmra.mxu0 %vm526_vm4, %v1187_v58 }
  0xef   :  { %v2007_v61 = vsel %vm165_vm12, 1.0, %v2466_v13  ;;  %v2006_v62 = vsel %vm164_vm13, 1.0, %v2466_v13 }
  0xf0   :  { %v254_v63 = vpack.c.bf16 %v2007_v61, %v2006_v62 }
  0xf1   :  { %v103_v0 = vpop.permute.xlu1 %102  ;;  %v100_v35 = vpop.permute.xlu0 %99 }
  0xf2   :  { %vm167_vm14 = vcmp.eq.s32.totalorder %v103_v0, %v2710_v6  ;;  %vm166_vm15 = vcmp.eq.s32.totalorder %v100_v35, %v2710_v6  ;;  %2342 = vmatprep.mubr.msk.bf16.mxu1 %vm526_vm4, %v254_v63 }
  0xf3   :  { %v2009_v1 = vsel %vm167_vm14, 1.0, %v2466_v13  ;;  %v2008_v2 = vsel %vm166_vm15, 1.0, %v2466_v13 }
  0xf4   :  { %v255_v3 = vpack.c.bf16 %v2009_v1, %v2008_v2 }
  0xf5   :  { %v1031_v4 = vpop.permute.xlu1 %1030  ;;  %v1028_v5 = vpop.permute.xlu0 %1027 }
  0xf6   :  { %vm1099_vm0 = vcmp.eq.s32.totalorder %v1031_v4, %v2710_v6  ;;  %vm1098_vm1 = vcmp.eq.s32.totalorder %v1028_v5, %v2710_v6  ;;  %2343 = vmatmul.mubr.msk.bf16.gmra.mxu1 %vm526_vm4, %v255_v3 }
  0xf7   :  { %v2175_v7 = vsel %vm1099_vm0, 1.0, %v2466_v13  ;;  %v2174_v8 = vsel %vm1098_vm1, 1.0, %v2466_v13 }
  0xf8   :  { %v1188_v9 = vpack.c.bf16 %v2175_v7, %v2174_v8 }
  0xf9   :  { %v1037_v10 = vpop.permute.xlu1 %1036  ;;  %v1034_v11 = vpop.permute.xlu0 %1033 }
  0xfa   :  { %vm1101_vm2 = vcmp.eq.s32.totalorder %v1037_v10, %v2710_v6  ;;  %vm1100_vm3 = vcmp.eq.s32.totalorder %v1034_v11, %v2710_v6  ;;  %2378 = vmatprep.mubr.msk.bf16.mxu0 %vm526_vm4, %v1188_v9 }
  0xfb   :  { %v2177_v12 = vsel %vm1101_vm2, 1.0, %v2466_v13  ;;  %v2176_v14 = vsel %vm1100_vm3, 1.0, %v2466_v13 }
  0xfc   :  { %v1189_v15 = vpack.c.bf16 %v2177_v12, %v2176_v14 }
  0xfd   :  { %v109_v16 = vpop.permute.xlu1 %108  ;;  %v106_v17 = vpop.permute.xlu0 %105 }
  0xfe   :  { %vm169_vm5 = vcmp.eq.s32.totalorder %v109_v16, %v2710_v6  ;;  %vm168_vm6 = vcmp.eq.s32.totalorder %v106_v17, %v2710_v6  ;;  %2379 = vmatmul.mubr.msk.bf16.gmra.mxu0 %vm526_vm4, %v1189_v15 }
  0xff   :  { %v2011_v18 = vsel %vm169_vm5, 1.0, %v2466_v13  ;;  %v2010_v19 = vsel %vm168_vm6, 1.0, %v2466_v13 }
 0x100   :  { %v256_v20 = vpack.c.bf16 %v2011_v18, %v2010_v19 }
 0x101   :  { %v115_v21 = vpop.permute.xlu1 %114  ;;  %v112_v22 = vpop.permute.xlu0 %111 }
 0x102   :  { %vm171_vm7 = vcmp.eq.s32.totalorder %v115_v21, %v2710_v6  ;;  %vm170_vm8 = vcmp.eq.s32.totalorder %v112_v22, %v2710_v6  ;;  %2346 = vmatprep.mubr.msk.bf16.mxu1 %vm526_vm4, %v256_v20 }
 0x103   :  { %v2013_v23 = vsel %vm171_vm7, 1.0, %v2466_v13  ;;  %v2012_v24 = vsel %vm170_vm8, 1.0, %v2466_v13 }
 0x104   :  { %v257_v25 = vpack.c.bf16 %v2013_v23, %v2012_v24 }
 0x105   :  { %v1043_v26 = vpop.permute.xlu1 %1042  ;;  %v1040_v27 = vpop.permute.xlu0 %1039 }
 0x106   :  { %vm1103_vm9 = vcmp.eq.s32.totalorder %v1043_v26, %v2710_v6  ;;  %vm1102_vm10 = vcmp.eq.s32.totalorder %v1040_v27, %v2710_v6  ;;  %2347 = vmatmul.mubr.msk.bf16.gmra.mxu1 %vm526_vm4, %v257_v25 }
 0x107   :  { %v2179_v28 = vsel %vm1103_vm9, 1.0, %v2466_v13  ;;  %v2178_v29 = vsel %vm1102_vm10, 1.0, %v2466_v13 }
 0x108   :  { %v1190_v30 = vpack.c.bf16 %v2179_v28, %v2178_v29 }
 0x109   :  { %v1049_v31 = vpop.permute.xlu1 %1048  ;;  %v1046_v32 = vpop.permute.xlu0 %1045 }
 0x10a   :  { %vm1105_vm11 = vcmp.eq.s32.totalorder %v1049_v31, %v2710_v6  ;;  %vm1104_vm12 = vcmp.eq.s32.totalorder %v1046_v32, %v2710_v6  ;;  %2382 = vmatprep.mubr.msk.bf16.mxu0 %vm526_vm4, %v1190_v30 }
 0x10b   :  { %v2181_v33 = vsel %vm1105_vm11, 1.0, %v2466_v13  ;;  %v2180_v34 = vsel %vm1104_vm12, 1.0, %v2466_v13 }
 0x10c   :  { %v1191_v36 = vpack.c.bf16 %v2181_v33, %v2180_v34 }
 0x10d   :  { %v121_v37 = vpop.permute.xlu1 %120  ;;  %v118_v38 = vpop.permute.xlu0 %117 }
 0x10e   :  { %vm173_vm13 = vcmp.eq.s32.totalorder %v121_v37, %v2710_v6  ;;  %vm172_vm14 = vcmp.eq.s32.totalorder %v118_v38, %v2710_v6  ;;  %2383 = vmatmul.mubr.msk.bf16.gmra.mxu0 %vm526_vm4, %v1191_v36 }
 0x10f   :  { %v2015_v39 = vsel %vm173_vm13, 1.0, %v2466_v13  ;;  %v2014_v40 = vsel %vm172_vm14, 1.0, %v2466_v13 }
 0x110   :  { %v258_v41 = vpack.c.bf16 %v2015_v39, %v2014_v40 }
 0x111   :  { %v127_v42 = vpop.permute.xlu1 %126  ;;  %v124_v43 = vpop.permute.xlu0 %123 }
 0x112   :  { %vm175_vm15 = vcmp.eq.s32.totalorder %v127_v42, %v2710_v6  ;;  %vm174_vm0 = vcmp.eq.s32.totalorder %v124_v43, %v2710_v6  ;;  %2350 = vmatprep.mubr.msk.bf16.mxu1 %vm526_vm4, %v258_v41 }
 0x113   :  { %v2017_v44 = vsel %vm175_vm15, 1.0, %v2466_v13  ;;  %v2016_v45 = vsel %vm174_vm0, 1.0, %v2466_v13 }
 0x114   :  { %v259_v46 = vpack.c.bf16 %v2017_v44, %v2016_v45 }
 0x115   :  { %v1055_v47 = vpop.permute.xlu1 %1054  ;;  %v1052_v48 = vpop.permute.xlu0 %1051 }
 0x116   :  { %vm1107_vm1 = vcmp.eq.s32.totalorder %v1055_v47, %v2710_v6  ;;  %vm1106_vm2 = vcmp.eq.s32.totalorder %v1052_v48, %v2710_v6  ;;  %2351 = vmatmul.mubr.msk.bf16.gmra.mxu1 %vm526_vm4, %v259_v46 }
 0x117   :  { %v2183_v49 = vsel %vm1107_vm1, 1.0, %v2466_v13  ;;  %v2182_v50 = vsel %vm1106_vm2, 1.0, %v2466_v13 }
 0x118   :  { %v1192_v51 = vpack.c.bf16 %v2183_v49, %v2182_v50 }
 0x119   :  { %v1061_v52 = vpop.permute.xlu1 %1060  ;;  %v1058_v53 = vpop.permute.xlu0 %1057 }
 0x11a   :  { %vm1109_vm3 = vcmp.eq.s32.totalorder %v1061_v52, %v2710_v6  ;;  %vm1108_vm5 = vcmp.eq.s32.totalorder %v1058_v53, %v2710_v6  ;;  %2386 = vmatprep.mubr.msk.bf16.mxu0 %vm526_vm4, %v1192_v51  ;;  %v2435_v53 = vld [vmem:[%s3257_s3 + $0x38] sm:$0xff]  }
 0x11b   :  { %v2185_v54 = vsel %vm1109_vm3, 1.0, %v2466_v13  ;;  %v2184_v55 = vsel %vm1108_vm5, 1.0, %v2466_v13  ;;  %2398 = vmatprep.subr.bf16.mxu1 %v2435_v53 }
 0x11c   :  { %v1193_v56 = vpack.c.bf16 %v2185_v54, %v2184_v55  ;;  %2399 = vmatpush3.bf16.msra.mxu1 %v2435_v53 }
 0x11d   :  { %v133_v57 = vpop.permute.xlu1 %132  ;;  %v130_v58 = vpop.permute.xlu0 %129 }
 0x11e   :  { %vm177_vm6 = vcmp.eq.s32.totalorder %v133_v57, %v2710_v6  ;;  %vm176_vm7 = vcmp.eq.s32.totalorder %v130_v58, %v2710_v6  ;;  %2387 = vmatmul.mubr.msk.bf16.gmra.mxu0 %vm526_vm4, %v1193_v56  ;;  %v2436_v58 = vld [vmem:[%s3257_s3 + $0x30] sm:$0xff]  }
 0x11f   :  { %v2019_v59 = vsel %vm177_vm6, 1.0, %v2466_v13  ;;  %v2018_v60 = vsel %vm176_vm7, 1.0, %v2466_v13  ;;  %2400 = vmatprep.subr.bf16.mxu1 %v2436_v58  ;;  %vm1840_vm7 = vcmask 1042434  }
 0x120   :  { %v260_v61 = vpack.c.bf16 %v2019_v59, %v2018_v60  ;;  %2401 = vmatpush3.bf16.msra.mxu1 %v2436_v58 }
 0x121   :  { %v139_v62 = vpop.permute.xlu1 %138  ;;  %v136_v63 = vpop.permute.xlu0 %135 }
 0x122   :  { %vm179_vm8 = vcmp.eq.s32.totalorder %v139_v62, %v2710_v6  ;;  %vm178_vm9 = vcmp.eq.s32.totalorder %v136_v63, %v2710_v6  ;;  %2354 = vmatprep.mubr.msk.bf16.mxu1 %vm526_vm4, %v260_v61  ;;  %v2437_v63 = vld [vmem:[%s3257_s3 + $0x28] sm:$0xff]  }
 0x123   :  { %v2021_v0 = vsel %vm179_vm8, 1.0, %v2466_v13  ;;  %v2020_v35 = vsel %vm178_vm9, 1.0, %v2466_v13  ;;  %2402 = vmatprep.subr.bf16.mxu1 %v2437_v63  ;;  %vm1842_vm8 = vcmask 1043459   ;;  %vm1844_vm9 = vcmask 1044484  }
 0x124   :  { %v261_v1 = vpack.c.bf16 %v2021_v0, %v2020_v35  ;;  %2403 = vmatpush3.bf16.msra.mxu1 %v2437_v63 }
 0x125   :  { %v1067_v2 = vpop.permute.xlu1 %1066  ;;  %v1064_v3 = vpop.permute.xlu0 %1063 }
 0x126   :  { %vm1111_vm10 = vcmp.eq.s32.totalorder %v1067_v2, %v2710_v6  ;;  %vm1110_vm11 = vcmp.eq.s32.totalorder %v1064_v3, %v2710_v6  ;;  %2355 = vmatmul.mubr.msk.bf16.gmra.mxu1 %vm526_vm4, %v261_v1 }
 0x127   :  { %v2187_v4 = vsel %vm1111_vm10, 1.0, %v2466_v13  ;;  %v2186_v5 = vsel %vm1110_vm11, 1.0, %v2466_v13  ;;  %vm1846_vm10 = vcmask 1045509   ;;  %vm1848_vm11 = vcmask 1046534  }
 0x128   :  { %v1194_v7 = vpack.c.bf16 %v2187_v4, %v2186_v5  ;;  %v2438_v5 = vld [vmem:[%s3257_s3 + $0x20] sm:$0xff]  }
 0x129   :  { %v1073_v8 = vpop.permute.xlu1 %1072  ;;  %v1070_v9 = vpop.permute.xlu0 %1069  ;;  %2404 = vmatprep.subr.bf16.mxu1 %v2438_v5 }
 0x12a   :  { %vm1113_vm12 = vcmp.eq.s32.totalorder %v1073_v8, %v2710_v6  ;;  %vm1112_vm13 = vcmp.eq.s32.totalorder %v1070_v9, %v2710_v6  ;;  %2390 = vmatprep.mubr.msk.bf16.mxu0 %vm526_vm4, %v1194_v7  ;;  %2405 = vmatpush3.bf16.msra.mxu1 %v2438_v5 }
 0x12b   :  { %v2189_v10 = vsel %vm1113_vm12, 1.0, %v2466_v13  ;;  %v2188_v11 = vsel %vm1112_vm13, 1.0, %v2466_v13  ;;  %vm1850_vm12 = vcmask 1047559  }
 0x12c   :  { %v1195_v12 = vpack.c.bf16 %v2189_v10, %v2188_v11  ;;  %v2439_v11 = vld [vmem:[%s3257_s3 + $0x18] sm:$0xff]  }
 0x12d   :  { %v145_v14 = vpop.permute.xlu1 %144  ;;  %v142_v15 = vpop.permute.xlu0 %141  ;;  %2406 = vmatprep.subr.bf16.mxu1 %v2439_v11 }
 0x12e   :  { %vm181_vm14 = vcmp.eq.s32.totalorder %v145_v14, %v2710_v6  ;;  %vm180_vm15 = vcmp.eq.s32.totalorder %v142_v15, %v2710_v6  ;;  %2391 = vmatmul.mubr.msk.bf16.gmra.mxu0 %vm526_vm4, %v1195_v12  ;;  %2407 = vmatpush3.bf16.msra.mxu1 %v2439_v11 }
 0x12f   :  { %v2023_v16 = vsel %vm181_vm14, 1.0, %v2466_v13  ;;  %v2022_v17 = vsel %vm180_vm15, 1.0, %v2466_v13 }
 0x130   :  { %v262_v18 = vpack.c.bf16 %v2023_v16, %v2022_v17 }
 0x131   :  { %v151_v19 = vpop.permute.xlu1 %150  ;;  %v148_v20 = vpop.permute.xlu0 %147 }
 0x132   :  { %vm183_vm0 = vcmp.eq.s32.totalorder %v151_v19, %v2710_v6  ;;  %vm182_vm1 = vcmp.eq.s32.totalorder %v148_v20, %v2710_v6  ;;  %2358 = vmatprep.mubr.msk.bf16.mxu1 %vm526_vm4, %v262_v18 }
 0x133   :  { %v2025_v21 = vsel %vm183_vm0, 1.0, %v2466_v13  ;;  %v2024_v22 = vsel %vm182_vm1, 1.0, %v2466_v13 }
 0x134   :  { %v263_v23 = vpack.c.bf16 %v2025_v21, %v2024_v22  ;;  %v2440_v21 = vld [vmem:[%s3257_s3 + $0x10] sm:$0xff]   ;;  %v3133_v22 = vld [vmem:[%s3256_s2] ss:$0 sm:$0xff] }
 0x135   :  { %v1079_v24 = vpop.permute.xlu1 %1078  ;;  %v1076_v25 = vpop.permute.xlu0 %1075  ;;  %2408 = vmatprep.subr.bf16.mxu1 %v2440_v21 }
 0x136   :  { %vm1115_vm2 = vcmp.eq.s32.totalorder %v1079_v24, %v2710_v6  ;;  %vm1114_vm3 = vcmp.eq.s32.totalorder %v1076_v25, %v2710_v6  ;;  %2359 = vmatmul.mubr.msk.bf16.gmra.mxu1 %vm526_vm4, %v263_v23 }
 0x137   :  { %v2191_v26 = vsel %vm1115_vm2, 1.0, %v2466_v13  ;;  %v2190_v27 = vsel %vm1114_vm3, 1.0, %v2466_v13  ;;  %2409 = vmatpush3.bf16.msra.mxu1 %v2440_v21 }
 0x138   :  { %v1196_v28 = vpack.c.bf16 %v2191_v26, %v2190_v27 }
 0x139   :  { %v1085_v29 = vpop.permute.xlu1 %1084  ;;  %v1082_v30 = vpop.permute.xlu0 %1081 }
 0x13a   :  { %vm1117_vm5 = vcmp.eq.s32.totalorder %v1085_v29, %v2710_v6  ;;  %vm1116_vm6 = vcmp.eq.s32.totalorder %v1082_v30, %v2710_v6  ;;  %2394 = vmatprep.mubr.msk.bf16.mxu0 %vm526_vm4, %v1196_v28  ;;  %v2441_v28 = vld [vmem:[%s3257_s3 + $0x8] sm:$0xff]   ;;  %v2442_v30 = vld [vmem:[%s3257_s3] sm:$0xff]  }
 0x13b   :  { %v2193_v31 = vsel %vm1117_vm5, 1.0, %v2466_v13  ;;  %v2192_v32 = vsel %vm1116_vm6, 1.0, %v2466_v13  ;;  %2410 = vmatprep.subr.bf16.mxu1 %v2441_v28 }
 0x13c   :  { %v1197_v33 = vpack.c.bf16 %v2193_v31, %v2192_v32  ;;  %2411 = vmatpush3.bf16.msra.mxu1 %v2441_v28 }
 0x13d   :  { %2412 = vmatprep.subr.bf16.mxu1 %v2442_v30 }
 0x13e   :  { %2395 = vmatmul.mubr.msk.bf16.gmra.mxu0 %vm526_vm4, %v1197_v33  ;;  %vm1838_vm4 = vcmask 1041409  }
 0x140   :  { %2413 = vmatpush3.bf16.msra.mxu1 %v2442_v30 }
 0x148   :  { %v2296_v34 = vpop.f32.mrf.mxu0 }
 0x14a   :  { %v609_v36 = vpop.f32.mrf.mxu0 }
 0x14c   :  { %v2297_v37 = vpop.f32.mrf.mxu0 }
 0x14e   :  { %v612_v38 = vpop.f32.mrf.mxu0 }
 0x150   :  { %v3056_v39 = vpop.f32.mrf.mxu0 }
 0x152   :  { %v3058_v40 = vpop.f32.mrf.mxu0 }
 0x154   :  { %v3062_v6 = vpop.f32.mrf.mxu0 }
 0x156   :  { %v3066_v43 = vpop.f32.mrf.mxu0 }
 0x157   :  { %v3060_v41 = vpop.f32.mrf.mxu1 }
 0x159   :  { %v3064_v42 = vpop.f32.mrf.mxu1 }
 0x15b   :  { %v3070_v44 = vpop.f32.mrf.mxu1 }
 0x15d   :  { %v3074_v46 = vpop.f32.mrf.mxu1 }
 0x15f   :  { %v3068_v13 = vpop.f32.mrf.mxu0 }
 0x161   :  { %v3072_v45 = vpop.f32.mrf.mxu0 }
 0x163   :  { %v3078_v48 = vpop.f32.mrf.mxu0 }
 0x165   :  { %v3082_v50 = vpop.f32.mrf.mxu0 }
 0x167   :  { %v3076_v47 = vpop.f32.mrf.mxu1 }
 0x169   :  { %v3080_v49 = vpop.f32.mrf.mxu1 }
 0x16b   :  { %v3086_v52 = vpop.f32.mrf.mxu1 }
 0x16d   :  { %v3093_v55 = vpop.f32.mrf.mxu1 }
 0x16f   :  { %v3084_v51 = vpop.f32.mrf.mxu0 }
 0x171   :  { %v3091_v54 = vpop.f32.mrf.mxu0 }
 0x173   :  { %v3097_v57 = vpop.f32.mrf.mxu0 }
 0x175   :  { %v3104_v60 = vpop.f32.mrf.mxu0 }
 0x177   :  { %v3095_v56 = vpop.f32.mrf.mxu1 }
 0x179   :  { %v3102_v59 = vpop.f32.mrf.mxu1 }
 0x17b   :  { %v3108_v62 = vpop.f32.mrf.mxu1 }
 0x17d   :  { %v3115_v35 = vpop.f32.mrf.mxu1 }
 0x17f   :  { %v3106_v61 = vpop.f32.mrf.mxu0 }
 0x181   :  { %v3113_v0 = vpop.f32.mrf.mxu0 }
 0x183   :  { %v3117_v2 = vpop.f32.mrf.mxu0 }
 0x185   :  { %v3119_v4 = vpop.f32.mrf.mxu0 }
 0x186   :  { %v2332_v1 = vpop.f32.mrf.mxu1 }
 0x187   :  { %v839_v14 = vadd.f32 %v2332_v1, %v2296_v34 }
 0x188   :  { %v830_v3 = vpop.f32.mrf.mxu1 }
 0x189   :  { %v831_v15 = vadd.f32 %v830_v3, %v609_v36 }
 0x18a   :  { %v2333_v8 = vpop.f32.mrf.mxu1 }
 0x18b   :  { %v842_v16 = vadd.f32 %v2333_v8, %v2297_v37 }
 0x18c   :  { %v833_v12 = vpop.f32.mrf.mxu1 }
 0x18d   :  { %v834_v18 = vadd.f32 %v833_v12, %v612_v38 }
 0x18e   :  { %v2368_v7 = vpop.f32.mrf.mxu0 }
 0x18f   :  { %v1426_v19 = vadd.f32 %v2368_v7, %v839_v14 }
 0x190   :  { %v1297_v9 = vpop.f32.mrf.mxu0 }
 0x191   :  { %v1424_v20 = vadd.f32 %v1297_v9, %v831_v15  ;;  %v1465_v26 = vadd.f32 %v3133_v22, %v1426_v19 }
 0x192   :  { %v2369_v10 = vpop.f32.mrf.mxu0 }
 0x193   :  { %v1427_v23 = vadd.f32 %v2369_v10, %v842_v16  ;;  %v1463_v27 = vadd.f32 %v3133_v22, %v1424_v20  ;;  %v1497_v33 = vmax.f32 %v1465_v26, 0.0 }
 0x194   :  { %v1300_v17 = vpop.f32.mrf.mxu0 }
 0x195   :  { %v1425_v24 = vadd.f32 %v1300_v17, %v834_v18  ;;  %v1466_v29 = vadd.f32 %v3133_v22, %v1427_v23  ;;  %v1495_v34 = vmax.f32 %v1463_v27, 0.0  ;;  %v1539_v58 = vrot.slane %v1497_v33, 4 }
 0x196   :  { %v2336_v25 = vpop.f32.mrf.mxu1 }
 0x197   :  { %v1464_v31 = vadd.f32 %v3133_v22, %v1425_v24  ;;  %v1498_v36 = vmax.f32 %v1466_v29, 0.0  ;;  %v1527_v63 = vrot.slane %v1495_v34, 4  ;;  %v1540_v8 = vmax.f32 %v1497_v33, %v1539_v58 }
 0x198   :  { %v846_v32 = vpop.f32.mrf.mxu1  ;;  %v855_v18 = vadd.f32 %v2336_v25, %v3056_v39 }
 0x199   :  { %v1496_v37 = vmax.f32 %v1464_v31, 0.0  ;;  %v1545_v1 = vrot.slane %v1498_v36, 4  ;;  %v1528_v9 = vmax.f32 %v1495_v34, %v1527_v63  ;;  %v1541_v16 = vrot.slane %v1540_v8, 2 }
 0x19a   :  { %v2337_v38 = vpop.f32.mrf.mxu1  ;;  %v847_v19 = vadd.f32 %v846_v32, %v3058_v40 }
 0x19b   :  { %v1533_v3 = vrot.slane %v1496_v37, 4  ;;  %v1546_v11 = vmax.f32 %v1498_v36, %v1545_v1  ;;  %v1529_v17 = vrot.slane %v1528_v9, 2  ;;  %v1542_v30 = vmax.f32 %v1540_v8, %v1541_v16 }
 0x19c   :  { %v849_v5 = vpop.f32.mrf.mxu1  ;;  %v858_v33 = vadd.f32 %v2337_v38, %v3062_v6 }
 0x19d   :  { %v1534_v12 = vmax.f32 %v1496_v37, %v1533_v3  ;;  %v1547_v20 = vrot.slane %v1546_v11, 2  ;;  %v850_v27 = vadd.f32 %v849_v5, %v3066_v43  ;;  %v1530_v31 = vmax.f32 %v1528_v9, %v1529_v17 }
 0x19e   :  { %v2372_v53 = vpop.f32.mrf.mxu0  ;;  %v1543_v6 = vrot.slane %v1542_v30, 1 }
 0x19f   :  { %v1535_v21 = vrot.slane %v1534_v12, 2  ;;  %v1430_v23 = vadd.f32 %v2372_v53, %v855_v18  ;;  %v1548_v36 = vmax.f32 %v1546_v11, %v1547_v20  ;;  %v1531_v38 = vrot.slane %v1530_v31, 1 }
 0x1a0   :  { %v1313_v7 = vpop.f32.mrf.mxu0 }
 0x1a1   :  { %v1428_v24 = vadd.f32 %v1313_v7, %v847_v19  ;;  %v1536_v25 = vmax.f32 %v1534_v12, %v1535_v21  ;;  %v1469_v32 = vadd.f32 %v3133_v22, %v1430_v23  ;;  %v1549_v7 = vrot.slane %v1548_v36, 1 }
 0x1a2   :  { %v2373_v14 = vpop.f32.mrf.mxu0  ;;  %v1544_v19 = vmax.f32 %v1542_v30, %v1543_v6  ;;  %v1532_v20 = vmax.f32 %v1530_v31, %v1531_v38 }
 0x1a3   :  { %v1467_v53 = vadd.f32 %v3133_v22, %v1428_v24  ;;  %v1431_v43 = vadd.f32 %v2373_v14, %v858_v33  ;;  %v1501_v11 = vmax.f32 %v1469_v32, 0.0  ;;  %v1550_v24 = vmax.f32 %v1548_v36, %v1549_v7 }
 0x1a4   :  { %v1316_v26 = vpop.f32.mrf.mxu0  ;;  %v1721_v32 = vpack.c.bf16 %v1544_v19, %v1544_v19 }
 0x1a5   :  { %v1429_v37 = vadd.f32 %v1316_v26, %v850_v27  ;;  %v1499_v12 = vmax.f32 %v1467_v53, 0.0  ;;  %v1563_v33 = vrot.slane %v1501_v11, 4  ;;  %v1719_v53 = vpack.c.bf16 %v1532_v20, %v1532_v20 }
 0x1a6   :  { %v2340_v10 = vpop.f32.mrf.mxu1  ;;  %v1722_v30 = vpack.c.bf16 %v1550_v24, %v1550_v24  ;;  %v3162_v7 = vunpack.c.l.b16 %v1721_v32 }
 0x1a7   :  { %v871_v28 = vadd.f32 %v2340_v10, %v3068_v13  ;;  %v1537_v10 = vrot.slane %v1536_v25, 1  ;;  %v1564_v36 = vmax.f32 %v1501_v11, %v1563_v33 }
 0x1a8   :  { %v862_v15 = vpop.f32.mrf.mxu1 }
 0x1a9   :  { %v863_v39 = vadd.f32 %v862_v15, %v3072_v45  ;;  %v1468_v45 = vadd.f32 %v3133_v22, %v1429_v37  ;;  %v1551_v37 = vrot.slane %v1499_v12, 4  ;;  %v1565_v11 = vrot.slane %v1564_v36, 2 }
 0x1aa   :  { %v2341_v29 = vpop.f32.mrf.mxu1 }
 0x1ab   :  { %v874_v13 = vadd.f32 %v2341_v29, %v3078_v48  ;;  %v1470_v48 = vadd.f32 %v3133_v22, %v1431_v43  ;;  %v1500_v26 = vmax.f32 %v1468_v45, 0.0  ;;  %v1538_v29 = vmax.f32 %v1536_v25, %v1537_v10 }
 0x1ac   :  { %v865_v63 = vpop.f32.mrf.mxu1  ;;  %v1552_v6 = vmax.f32 %v1499_v12, %v1551_v37  ;;  %v1806_v45 = vunpack.c.l.b16 %v1719_v53  ;;  %v1566_v53 = vmax.f32 %v1564_v36, %v1565_v11 }
 0x1ad   :  { %v866_v14 = vadd.f32 %v865_v63, %v3082_v50  ;;  %v1557_v31 = vrot.slane %v1500_v26, 4  ;;  %v1720_v63 = vpack.c.bf16 %v1538_v29, %v1538_v29 }
 0x1ae   :  { %v2376_v34 = vpop.f32.mrf.mxu0 }
 0x1af   :  { %v1434_v40 = vadd.f32 %v2376_v34, %v871_v28 }
 0x1b0   :  { %v1329_v58 = vpop.f32.mrf.mxu0 }
 0x1b1   :  { %v1473_v1 = vadd.f32 %v3133_v22, %v1434_v40  ;;  %v1432_v3 = vadd.f32 %v1329_v58, %v863_v39  ;;  %v1502_v39 = vmax.f32 %v1470_v48, 0.0 }
 0x1b2   :  { %v2377_v5 = vpop.f32.mrf.mxu0 }
 0x1b3   :  { %v1471_v8 = vadd.f32 %v3133_v22, %v1432_v3  ;;  %v1435_v9 = vadd.f32 %v2377_v5, %v874_v13  ;;  %v1505_v16 = vmax.f32 %v1473_v1, 0.0  ;;  %v1569_v25 = vrot.slane %v1502_v39, 4 }
 0x1b4   :  { %v1332_v15 = vpop.f32.mrf.mxu0 }
 0x1b5   :  { %v1503_v17 = vmax.f32 %v1471_v8, 0.0  ;;  %v1474_v18 = vadd.f32 %v3133_v22, %v1435_v9  ;;  %v1433_v21 = vadd.f32 %v1332_v15, %v866_v14  ;;  %v1587_v40 = vrot.slane %v1505_v16, 4 }
 0x1b6   :  { %v2344_v23 = vpop.f32.mrf.mxu1  ;;  %v3164_v14 = vunpack.c.l.b16 %v1722_v30  ;;  %v1558_v15 = vmax.f32 %v1500_v26, %v1557_v31 }
 0x1b7   :  { %v1575_v27 = vrot.slane %v1503_v17, 4  ;;  %v1506_v28 = vmax.f32 %v1474_v18, 0.0  ;;  %v1472_v34 = vadd.f32 %v3133_v22, %v1433_v21  ;;  %v1588_v38 = vmax.f32 %v1505_v16, %v1587_v40 }
 0x1b8   :  { %v878_v50 = vpop.f32.mrf.mxu1  ;;  %v887_v5 = vadd.f32 %v2344_v23, %v3084_v51  ;;  %v1807_v18 = vunpack.c.l.b16 %v1720_v63  ;;  %v1553_v51 = vrot.slane %v1552_v6, 2  ;;  %v1570_v21 = vmax.f32 %v1502_v39, %v1569_v25 }
 0x1b9   :  { %v1576_v58 = vmax.f32 %v1503_v17, %v1575_v27  ;;  %v1504_v43 = vmax.f32 %v1472_v34, 0.0  ;;  %v1593_v13 = vrot.slane %v1506_v28, 4  ;;  %v879_v12 = vadd.f32 %v878_v50, %v3091_v54 }
 0x1ba   :  { %v2345_v3 = vpop.f32.mrf.mxu1  ;;  %v1589_v23 = vrot.slane %v1588_v38, 2  ;;  %v1559_v34 = vrot.slane %v1558_v15, 2  ;;  %v1554_v30 = vmax.f32 %v1552_v6, %v1553_v51  ;;  %v1571_v63 = vrot.slane %v1570_v21, 2 }
 0x1bb   :  { %v1581_v1 = vrot.slane %v1504_v43, 4  ;;  %v1577_v8 = vrot.slane %v1576_v58, 2  ;;  %v1594_v48 = vmax.f32 %v1506_v28, %v1593_v13  ;;  %v890_v33 = vadd.f32 %v2345_v3, %v3097_v57 }
 0x1bc   :  { %v881_v16 = vpop.f32.mrf.mxu1  ;;  %v1590_v31 = vmax.f32 %v1588_v38, %v1589_v23  ;;  %v1560_v25 = vmax.f32 %v1558_v15, %v1559_v34 }
 0x1bd   :  { %v1582_v9 = vmax.f32 %v1504_v43, %v1581_v1  ;;  %v1578_v27 = vmax.f32 %v1576_v58, %v1577_v8  ;;  %v1595_v37 = vrot.slane %v1594_v48, 2  ;;  %v882_v40 = vadd.f32 %v881_v16, %v3104_v60 }
 0x1be   :  { %v2380_v10 = vpop.f32.mrf.mxu0  ;;  %v1591_v6 = vrot.slane %v1590_v31, 1  ;;  %v1572_v16 = vmax.f32 %v1570_v21, %v1571_v63  ;;  %v1561_v15 = vrot.slane %v1560_v25, 1 }
 0x1bf   :  { %v1438_v17 = vadd.f32 %v2380_v10, %v887_v5  ;;  %v1583_v19 = vrot.slane %v1582_v9, 2  ;;  %v1579_v57 = vrot.slane %v1578_v27, 1  ;;  %v1596_v5 = vmax.f32 %v1594_v48, %v1595_v37 }
 0x1c0   :  { %v1345_v20 = vpop.f32.mrf.mxu0 }
 0x1c1   :  { %v1477_v24 = vadd.f32 %v3133_v22, %v1438_v17  ;;  %v1584_v29 = vmax.f32 %v1582_v9, %v1583_v19  ;;  %v1436_v26 = vadd.f32 %v1345_v20, %v879_v12  ;;  %v1567_v9 = vrot.slane %v1566_v53, 1 }
 0x1c2   :  { %v2381_v28 = vpop.f32.mrf.mxu0  ;;  %v1555_v19 = vrot.slane %v1554_v30, 1  ;;  %v1580_v20 = vmax.f32 %v1578_v27, %v1579_v57  ;;  %v1597_v48 = vrot.slane %v1596_v5, 1 }
 0x1c3   :  { %v1509_v32 = vmax.f32 %v1477_v24, 0.0  ;;  %v1585_v54 = vrot.slane %v1584_v29, 1  ;;  %v1475_v50 = vadd.f32 %v3133_v22, %v1436_v26  ;;  %v1439_v43 = vadd.f32 %v2381_v28, %v890_v33 }
 0x1c4   :  { %v1348_v39 = vpop.f32.mrf.mxu0  ;;  %v1839_v24 = vsel %vm1838_vm4, %v1807_v18, %v1806_v45  ;;  %v1727_v21 = vpack.c.bf16 %v1580_v20, %v1580_v20  ;;  %v1562_v45 = vmax.f32 %v1560_v25, %v1561_v15  ;;  %v1598_v18 = vmax.f32 %v1596_v5, %v1597_v48 }
 0x1c5   :  { %v1611_v58 = vrot.slane %v1509_v32, 4  ;;  %v1437_v13 = vadd.f32 %v1348_v39, %v882_v40  ;;  %v1507_v1 = vmax.f32 %v1475_v50, 0.0  ;;  %v1478_v3 = vadd.f32 %v3133_v22, %v1439_v43 }
 0x1c6   :  { %v2348_v8 = vpop.f32.mrf.mxu1  ;;  %v1586_v10 = vmax.f32 %v1584_v29, %v1585_v54  ;;  %v3174_v40 = vmax.f32 %v1566_v53, %v1567_v9  ;;  %v1592_v54 = vmax.f32 %v1590_v31, %v1591_v6  ;;  %v1573_v43 = vrot.slane %v1572_v16, 1 }
 0x1c7   :  { %v1612_v60 = vmax.f32 %v1509_v32, %v1611_v58  ;;  %v1476_v36 = vadd.f32 %v3133_v22, %v1437_v13  ;;  %v1599_v17 = vrot.slane %v1507_v1, 4  ;;  %v1510_v11 = vmax.f32 %v1478_v3, 0.0 }
 0x1c8   :  { %v894_v26 = vpop.f32.mrf.mxu1  ;;  %v1728_v28 = vpack.c.bf16 %v1586_v10, %v1586_v10  ;;  %v1556_v32 = vmax.f32 %v1554_v30, %v1555_v19  ;;  %v1841_v57 = vsel %vm1840_vm7, %v3162_v7, %v1839_v24  ;;  %v1729_v9 = vpack.c.bf16 %v1592_v54, %v1592_v54 }
 0x1c9   :  { %v1613_v38 = vrot.slane %v1612_v60, 2  ;;  %v1508_v12 = vmax.f32 %v1476_v36, 0.0  ;;  %v1600_v51 = vmax.f32 %v1507_v1, %v1599_v17  ;;  %v1617_v23 = vrot.slane %v1510_v11, 4 }
 0x1ca   :  { %v2349_v63 = vpop.f32.mrf.mxu1  ;;  %v1815_v1 = vunpack.c.l.b16 %v1728_v28  ;;  %v1723_v36 = vpack.c.bf16 %v1556_v32, %v1556_v32  ;;  %v1574_v25 = vmax.f32 %v1572_v16, %v1573_v43  ;;  %v1814_v5 = vunpack.c.l.b16 %v1727_v21 }
 0x1cb   :  { %v1605_v33 = vrot.slane %v1508_v12, 4  ;;  %v1614_v34 = vmax.f32 %v1612_v60, %v1613_v38  ;;  %v1601_v37 = vrot.slane %v1600_v51, 2  ;;  %v1618_v29 = vmax.f32 %v1510_v11, %v1617_v23 }
 0x1cc   :  { %v1725_v60 = vpack.c.bf16 %v3174_v40, %v3174_v40  ;;  %v1724_v6 = vpack.c.bf16 %v1562_v45, %v1562_v45  ;;  %v1730_v38 = vpack.c.bf16 %v1598_v18, %v1598_v18  ;;  %v897_v20 = vpop.f32.mrf.mxu1  ;;  %v895_v15 = vadd.f32 %v894_v26, %v3113_v0 }
 0x1cd   :  { %v1606_v50 = vmax.f32 %v1508_v12, %v1605_v33  ;;  %v1602_v27 = vmax.f32 %v1600_v51, %v1601_v37  ;;  %v1619_v39 = vrot.slane %v1618_v29, 2  ;;  %v1615_v53 = vrot.slane %v1614_v34, 1 }
 0x1ce   :  { %v2384_v58 = vpop.f32.mrf.mxu0  ;;  %v903_v12 = vadd.f32 %v2348_v8, %v3106_v61  ;;  %v1852_v51 = vsel %vm1838_vm4, %v1815_v1, %v1814_v5  ;;  %v1810_v48 = vunpack.c.l.b16 %v1723_v36  ;;  %v1816_v33 = vunpack.c.l.b16 %v1729_v9 }
 0x1cf   :  { %v1607_v13 = vrot.slane %v1606_v50, 2  ;;  %v1603_v3 = vrot.slane %v1602_v27, 1  ;;  %v1620_v30 = vmax.f32 %v1618_v29, %v1619_v39  ;;  %v1616_v23 = vmax.f32 %v1614_v34, %v1615_v53 }
 0x1d0   :  { %v1361_v31 = vpop.f32.mrf.mxu0  ;;  %v1442_v16 = vadd.f32 %v2384_v58, %v903_v12  ;;  %v906_v40 = vadd.f32 %v2349_v63, %v3117_v2  ;;  %v898_v32 = vadd.f32 %v897_v20, %v3119_v4  ;;  %v1853_v43 = vsel %vm1840_vm7, %v1816_v33, %v1852_v51 }
 0x1d1   :  { %v1608_v10 = vmax.f32 %v1606_v50, %v1607_v13  ;;  %v1604_v17 = vmax.f32 %v1602_v27, %v1603_v3  ;;  %v1621_v11 = vrot.slane %v1620_v30, 1  ;;  %v1440_v54 = vadd.f32 %v1361_v31, %v895_v15 }
 0x1d2   :  { %v2385_v19 = vpop.f32.mrf.mxu0  ;;  %v1811_v50 = vunpack.c.l.b16 %v1724_v6  ;;  %v1817_v34 = vunpack.c.l.b16 %v1730_v38  ;;  %v1733_v21 = vpack.c.bf16 %v1616_v23, %v1616_v23  ;;  %v1481_v58 = vadd.f32 %v3133_v22, %v1442_v16 }
 0x1d3   :  { %v1609_v7 = vrot.slane %v1608_v10, 1  ;;  %v1731_v24 = vpack.c.bf16 %v1604_v17, %v1604_v17  ;;  %v1622_v29 = vmax.f32 %v1620_v30, %v1621_v11  ;;  %v1443_v27 = vadd.f32 %v2385_v19, %v906_v40 }
 0x1d4   :  { %v1364_v37 = vpop.f32.mrf.mxu0  ;;  %v1843_v45 = vsel %vm1842_vm8, %v3164_v14, %v1841_v57  ;;  %v1479_v4 = vadd.f32 %v3133_v22, %v1440_v54  ;;  %v1854_v13 = vsel %vm1842_vm8, %v1817_v34, %v1853_v43  ;;  %v1812_v63 = vunpack.c.l.b16 %v1725_v60 }
 0x1d5   :  { %v1610_v28 = vmax.f32 %v1608_v10, %v1609_v7  ;;  %v1818_v61 = vunpack.c.l.b16 %v1731_v24  ;;  %v1441_v0 = vadd.f32 %v1364_v37, %v898_v32  ;;  %v1734_v2 = vpack.c.bf16 %v1622_v29, %v1622_v29 }
 0x1d6   :  { %v2352_v26 = vpop.f32.mrf.mxu1  ;;  %v1845_v18 = vsel %vm1844_vm9, %v1810_v48, %v1843_v45  ;;  %v1726_v1 = vpack.c.bf16 %v1574_v25, %v1574_v25  ;;  %v1820_v30 = vunpack.c.l.b16 %v1733_v21  ;;  %v1482_v31 = vadd.f32 %v3133_v22, %v1443_v27 }
 0x1d7   :  { %v1732_v8 = vpack.c.bf16 %v1610_v28, %v1610_v28  ;;  %v1847_v53 = vsel %vm1846_vm10, %v1811_v50, %v1845_v18  ;;  %v1855_v3 = vsel %vm1844_vm9, %v1818_v61, %v1854_v13  ;;  %v1480_v36 = vadd.f32 %v3133_v22, %v1441_v0 }
 0x1d8   :  { %v910_v14 = vpop.f32.mrf.mxu1  ;;  %v1513_v9 = vmax.f32 %v1481_v58, 0.0  ;;  %v1511_v10 = vmax.f32 %v1479_v4, 0.0  ;;  %v1821_v17 = vunpack.c.l.b16 %v1734_v2  ;;  %v1849_v60 = vsel %vm1848_vm11, %v1812_v63, %v1847_v53 }
 0x1d9   :  { %v1819_v39 = vunpack.c.l.b16 %v1732_v8  ;;  %v1813_v11 = vunpack.c.l.b16 %v1726_v1  ;;  %v1514_v19 = vmax.f32 %v1482_v31, 0.0  ;;  %v1512_v6 = vmax.f32 %v1480_v36, 0.0 }
 0x1da   :  { %v2353_v38 = vpop.f32.mrf.mxu1  ;;  %v1635_v20 = vrot.slane %v1513_v9, 4  ;;  %v1623_v23 = vrot.slane %v1511_v10, 4  ;;  %v911_v50 = vadd.f32 %v910_v14, %v3064_v42  ;;  %v919_v2 = vadd.f32 %v2352_v26, %v3060_v41 }
 0x1db   :  { %v1856_v57 = vsel %vm1846_vm10, %v1819_v39, %v1855_v3  ;;  %v1851_v51 = vsel %vm1850_vm12, %v1813_v11, %v1849_v60  ;;  %v1641_v48 = vrot.slane %v1514_v19, 4  ;;  %v1629_v33 = vrot.slane %v1512_v6, 4 }
 0x1dc   :  { %v1857_v25 = vsel %vm1848_vm11, %v1820_v30, %v1856_v57  ;;  %v913_v28 = vpop.f32.mrf.mxu1  ;;  %v1636_v16 = vmax.f32 %v1513_v9, %v1635_v20  ;;  %v1624_v37 = vmax.f32 %v1511_v10, %v1623_v23 }
 0x1dd   :  { %v1858_v12 = vsel %vm1850_vm12, %v1821_v17, %v1857_v25  ;;  %v1642_v32 = vmax.f32 %v1514_v19, %v1641_v48  ;;  %v1630_v54 = vmax.f32 %v1512_v6, %v1629_v33  ;;  %v914_v61 = vadd.f32 %v913_v28, %v3074_v46 }
 0x1de   :  { %v2388_v5 = vpop.f32.mrf.mxu0  ;;  %v1873_v24 = vpack.c.b16 %v1858_v12, %v1851_v51  ;;  %v1637_v43 = vrot.slane %v1636_v16, 2  ;;  %v1625_v34 = vrot.slane %v1624_v37, 2  ;;  %v922_v46 = vadd.f32 %v2353_v38, %v3070_v44 }
 0x1df   :  { %v1643_v0 = vrot.slane %v1642_v32, 2  ;;  %v1631_v39 = vrot.slane %v1630_v54, 2  ;;  %v1446_v1 = vadd.f32 %v2388_v5, %v919_v2 }
 0x1e0   :  { %v1377_v7 = vpop.f32.mrf.mxu0  ;;  %2414 = vmatprep.mubr.bf16.mxu1 %v1873_v24  ;;  %v1638_v45 = vmax.f32 %v1636_v16, %v1637_v43  ;;  %v1626_v18 = vmax.f32 %v1624_v37, %v1625_v34 }
 0x1e1   :  { %v1444_v21 = vadd.f32 %v1377_v7, %v911_v50  ;;  %v1644_v30 = vmax.f32 %v1642_v32, %v1643_v0  ;;  %v1632_v31 = vmax.f32 %v1630_v54, %v1631_v39  ;;  %v1485_v44 = vadd.f32 %v3133_v22, %v1446_v1 }
 0x1e2   :  { %v2389_v15 = vpop.f32.mrf.mxu0  ;;  %v1639_v57 = vrot.slane %v1638_v45, 1  ;;  %v1627_v9 = vrot.slane %v1626_v18, 1 }
 0x1e3   :  { %v1483_v13 = vadd.f32 %v3133_v22, %v1444_v21  ;;  %v1447_v41 = vadd.f32 %v2389_v15, %v922_v46  ;;  %v1645_v11 = vrot.slane %v1644_v30, 1  ;;  %v1633_v19 = vrot.slane %v1632_v31, 1 }
 0x1e4   :  { %v1380_v40 = vpop.f32.mrf.mxu0  ;;  %v1640_v12 = vmax.f32 %v1638_v45, %v1639_v57  ;;  %v1628_v24 = vmax.f32 %v1626_v18, %v1627_v9  ;;  %v1517_v28 = vmax.f32 %v1485_v44, 0.0 }
 0x1e5   :  { %v1445_v27 = vadd.f32 %v1380_v40, %v914_v61  ;;  %v1515_v10 = vmax.f32 %v1483_v13, 0.0  ;;  %v1486_v20 = vadd.f32 %v3133_v22, %v1447_v41  ;;  %v1646_v37 = vmax.f32 %v1644_v30, %v1645_v11 }
 0x1e6   :  { %v2356_v29 = vpop.f32.mrf.mxu1  ;;  %v1737_v43 = vpack.c.bf16 %v1640_v12, %v1640_v12  ;;  %v1735_v34 = vpack.c.bf16 %v1628_v24, %v1628_v24  ;;  %v1659_v0 = vrot.slane %v1517_v28, 4 }
 0x1e7   :  { %v935_v4 = vadd.f32 %v2356_v29, %v3076_v47  ;;  %v1484_v42 = vadd.f32 %v3133_v22, %v1445_v27  ;;  %v1647_v15 = vrot.slane %v1515_v10, 4  ;;  %v1634_v29 = vmax.f32 %v1632_v31, %v1633_v19 }
 0x1e8   :  { %v926_v8 = vpop.f32.mrf.mxu1  ;;  %v1518_v50 = vmax.f32 %v1486_v20, 0.0  ;;  %v1738_v45 = vpack.c.bf16 %v1646_v37, %v1646_v37  ;;  %v3218_v1 = vunpack.c.l.b16 %v1737_v43 }
 0x1e9   :  { %v927_v53 = vadd.f32 %v926_v8, %v3080_v49  ;;  %v1516_v17 = vmax.f32 %v1484_v42, 0.0  ;;  %v1648_v21 = vmax.f32 %v1515_v10, %v1647_v15  ;;  %v1736_v2 = vpack.c.bf16 %v1634_v29, %v1634_v29 }
 0x1ea   :  { %v2357_v58 = vpop.f32.mrf.mxu1  ;;  %v1665_v13 = vrot.slane %v1518_v50, 4 }
 0x1eb   :  { %v938_v60 = vadd.f32 %v2357_v58, %v3086_v52  ;;  %v1653_v52 = vrot.slane %v1516_v17, 4 }
 0x1ec   :  { %v929_v36 = vpop.f32.mrf.mxu1 }
 0x1ed   :  { %v930_v49 = vadd.f32 %v929_v36, %v3093_v55  ;;  %v1654_v27 = vmax.f32 %v1516_v17, %v1653_v52  ;;  %v1660_v36 = vmax.f32 %v1517_v28, %v1659_v0 }
 0x1ee   :  { %v2392_v63 = vpop.f32.mrf.mxu0 }
 0x1ef   :  { %v1450_v3 = vadd.f32 %v2392_v63, %v935_v4  ;;  %v1655_v30 = vrot.slane %v1654_v27, 2 }
 0x1f0   :  { %v1393_v14 = vpop.f32.mrf.mxu0 }
 0x1f1   :  { %v1489_v47 = vadd.f32 %v3133_v22, %v1450_v3  ;;  %v1448_v26 = vadd.f32 %v1393_v14, %v927_v53  ;;  %v3220_v53 = vunpack.c.l.b16 %v1735_v34  ;;  %v1649_v3 = vrot.slane %v1648_v21, 2 }
 0x1f2   :  { %v2393_v25 = vpop.f32.mrf.mxu0  ;;  %v1656_v11 = vmax.f32 %v1654_v27, %v1655_v30 }
 0x1f3   :  { %v1487_v5 = vadd.f32 %v3133_v22, %v1448_v26  ;;  %v1521_v6 = vmax.f32 %v1489_v47, 0.0  ;;  %v1451_v38 = vadd.f32 %v2393_v25, %v938_v60  ;;  %v3222_v47 = vunpack.c.l.b16 %v1738_v45 }
 0x1f4   :  { %v1396_v7 = vpop.f32.mrf.mxu0  ;;  %v1823_v26 = vunpack.c.l.b16 %v1736_v2  ;;  %v1657_v37 = vrot.slane %v1656_v11, 1 }
 0x1f5   :  { %v1519_v51 = vmax.f32 %v1487_v5, 0.0  ;;  %v1449_v23 = vadd.f32 %v1396_v7, %v930_v49  ;;  %v1490_v48 = vadd.f32 %v3133_v22, %v1451_v38  ;;  %v1683_v40 = vrot.slane %v1521_v6, 4 }
 0x1f6   :  { %v2360_v33 = vpop.f32.mrf.mxu1  ;;  %v1650_v5 = vmax.f32 %v1648_v21, %v1649_v3  ;;  %v1859_v30 = vsel %vm1838_vm4, %v1823_v26, %v3220_v53 }
 0x1f7   :  { %v1671_v55 = vrot.slane %v1519_v51, 4  ;;  %v1488_v16 = vadd.f32 %v3133_v22, %v1449_v23  ;;  %v1522_v32 = vmax.f32 %v1490_v48, 0.0  ;;  %v1684_v4 = vmax.f32 %v1521_v6, %v1683_v40 }
 0x1f8   :  { %v942_v54 = vpop.f32.mrf.mxu1  ;;  %v951_v46 = vadd.f32 %v2360_v33, %v3095_v56  ;;  %v1666_v56 = vmax.f32 %v1518_v50, %v1665_v13  ;;  %v1661_v23 = vrot.slane %v1660_v36, 2 }
 0x1f9   :  { %v1672_v61 = vmax.f32 %v1519_v51, %v1671_v55  ;;  %v1520_v8 = vmax.f32 %v1488_v16, 0.0  ;;  %v1689_v39 = vrot.slane %v1522_v32, 4  ;;  %v1685_v9 = vrot.slane %v1684_v4, 2 }
 0x1fa   :  { %v2361_v18 = vpop.f32.mrf.mxu1  ;;  %v943_v10 = vadd.f32 %v942_v54, %v3102_v59  ;;  %v1667_v48 = vrot.slane %v1666_v56, 2  ;;  %v1651_v16 = vrot.slane %v1650_v5, 1  ;;  %v1662_v50 = vmax.f32 %v1660_v36, %v1661_v23 }
 0x1fb   :  { %v1677_v58 = vrot.slane %v1520_v8, 4  ;;  %v1673_v42 = vrot.slane %v1672_v61, 2  ;;  %v1690_v14 = vmax.f32 %v1522_v32, %v1689_v39  ;;  %v954_v19 = vadd.f32 %v2361_v18, %v3108_v62 }
 0x1fc   :  { %v945_v17 = vpop.f32.mrf.mxu1  ;;  %v1686_v59 = vmax.f32 %v1684_v4, %v1685_v9  ;;  %v1668_v34 = vmax.f32 %v1666_v56, %v1667_v48  ;;  %v1652_v39 = vmax.f32 %v1650_v5, %v1651_v16 }
 0x1fd   :  { %v1678_v63 = vmax.f32 %v1520_v8, %v1677_v58  ;;  %v1674_v25 = vmax.f32 %v1672_v61, %v1673_v42  ;;  %v1691_v7 = vrot.slane %v1690_v14, 2  ;;  %v946_v20 = vadd.f32 %v945_v17, %v3115_v35 }
 0x1fe   :  { %v2396_v31 = vpop.f32.mrf.mxu0  ;;  %v1687_v61 = vrot.slane %v1686_v59, 1  ;;  %v1658_v58 = vmax.f32 %v1656_v11, %v1657_v37 }
 0x1ff   :  { %v1679_v57 = vrot.slane %v1678_v63, 2  ;;  %v1454_v41 = vadd.f32 %v2396_v31, %v951_v46  ;;  %v1675_v33 = vrot.slane %v1674_v25, 1  ;;  %v1692_v40 = vmax.f32 %v1690_v14, %v1691_v7 }
 0x200   :  { %v1409_v60 = vpop.f32.mrf.mxu0  ;;  %v1688_v46 = vmax.f32 %v1686_v59, %v1687_v61  ;;  %v1669_v31 = vrot.slane %v1668_v34, 1  ;;  %v1740_v17 = vpack.c.bf16 %v1658_v58, %v1658_v58 }
 0x201   :  { %v1680_v44 = vmax.f32 %v1678_v63, %v1679_v57  ;;  %v1493_v49 = vadd.f32 %v3133_v22, %v1454_v41  ;;  %v1452_v6 = vadd.f32 %v1409_v60, %v943_v10  ;;  %v1676_v21 = vmax.f32 %v1674_v25, %v1675_v33 }
 0x202   :  { %v2397_v38 = vpop.f32.mrf.mxu0  ;;  %v1693_v4 = vrot.slane %v1692_v40, 1  ;;  %v1663_v63 = vrot.slane %v1662_v50, 1  ;;  %v1739_v57 = vpack.c.bf16 %v1652_v39, %v1652_v39 }
 0x203   :  { %v1681_v12 = vrot.slane %v1680_v44, 1  ;;  %v1525_v51 = vmax.f32 %v1493_v49, 0.0  ;;  %v1491_v24 = vadd.f32 %v3133_v22, %v1452_v6  ;;  %v1455_v15 = vadd.f32 %v2397_v38, %v954_v19 }
 0x204   :  { %v1412_v52 = vpop.f32.mrf.mxu0  ;;  %v1743_v36 = vpack.c.bf16 %v1676_v21, %v1676_v21  ;;  %v1694_v60 = vmax.f32 %v1692_v40, %v1693_v4  ;;  %v1745_v49 = vpack.c.bf16 %v1688_v46, %v1688_v46  ;;  %v1860_v19 = vsel %vm1840_vm7, %v3218_v1, %v1859_v30  ;;  %v2217_v4 = vld [vmem:[%s3258_s4] ss:$0 sm:$0xff] }
 0x205   :  { %v1707_v28 = vrot.slane %v1525_v51, 4  ;;  %v1453_v55 = vadd.f32 %v1412_v52, %v946_v20  ;;  %v1523_v62 = vmax.f32 %v1491_v24, 0.0  ;;  %v1494_v29 = vadd.f32 %v3133_v22, %v1455_v15 }
 0x206   :  { %v1682_v32 = vmax.f32 %v1680_v44, %v1681_v12  ;;  %v1664_v44 = vmax.f32 %v1662_v50, %v1663_v63  ;;  %v1670_v6 = vmax.f32 %v1668_v34, %v1669_v31  ;;  %v1830_v53 = vunpack.c.l.b16 %v1743_v36 }
 0x207   :  { %v1708_v54 = vmax.f32 %v1525_v51, %v1707_v28  ;;  %v1492_v35 = vadd.f32 %v3133_v22, %v1453_v55  ;;  %v1695_v8 = vrot.slane %v1523_v62, 4  ;;  %v1526_v43 = vmax.f32 %v1494_v29, 0.0 }
 0x208   :  { %v1744_v18 = vpack.c.bf16 %v1682_v32, %v1682_v32  ;;  %v1826_v38 = vunpack.c.l.b16 %v1739_v57  ;;  %v1827_v51 = vunpack.c.l.b16 %v1740_v17  ;;  %v1746_v23 = vpack.c.bf16 %v1694_v60, %v1694_v60 }
 0x209   :  { %v1709_v27 = vrot.slane %v1708_v54, 2  ;;  %v1524_v0 = vmax.f32 %v1492_v35, 0.0  ;;  %v1696_v45 = vmax.f32 %v1523_v62, %v1695_v8  ;;  %v1713_v2 = vrot.slane %v1526_v43, 4 }
 0x20a   :  { %v1831_v56 = vunpack.c.l.b16 %v1744_v18  ;;  %v1741_v15 = vpack.c.bf16 %v1664_v44, %v1664_v44  ;;  %v1832_v52 = vunpack.c.l.b16 %v1745_v49  ;;  %v1861_v28 = vsel %vm1842_vm8, %v3222_v47, %v1860_v19 }
 0x20b   :  { %v1710_v13 = vmax.f32 %v1708_v54, %v1709_v27  ;;  %v1701_v42 = vrot.slane %v1524_v0, 4  ;;  %v1697_v3 = vrot.slane %v1696_v45, 2  ;;  %v1714_v22 = vmax.f32 %v1526_v43, %v1713_v2 }
 0x20c   :  { %v1866_v59 = vsel %vm1838_vm4, %v1831_v56, %v1830_v53  ;;  %v1742_v1 = vpack.c.bf16 %v1670_v6, %v1670_v6  ;;  %v1862_v16 = vsel %vm1844_vm9, %v1826_v38, %v1861_v28  ;;  %v1833_v32 = vunpack.c.l.b16 %v1746_v23 }
 0x20d   :  { %v1702_v14 = vmax.f32 %v1524_v0, %v1701_v42  ;;  %v1711_v41 = vrot.slane %v1710_v13, 1  ;;  %v1698_v9 = vmax.f32 %v1696_v45, %v1697_v3  ;;  %v1715_v10 = vrot.slane %v1714_v22, 2 }
 0x20e   :  { %v1867_v37 = vsel %vm1840_vm7, %v1832_v52, %v1866_v59  ;;  %v1863_v40 = vsel %vm1846_vm10, %v1827_v51, %v1862_v16  ;;  %v1828_v50 = vunpack.c.l.b16 %v1741_v15  ;;  %v1829_v21 = vunpack.c.l.b16 %v1742_v1 }
 0x20f   :  { %v1703_v25 = vrot.slane %v1702_v14, 2  ;;  %v1699_v5 = vrot.slane %v1698_v9, 1  ;;  %v1716_v11 = vmax.f32 %v1714_v22, %v1715_v10  ;;  %v1712_v7 = vmax.f32 %v1710_v13, %v1711_v41 }
 0x210   :  { %v1868_v61 = vsel %vm1842_vm8, %v1833_v32, %v1867_v37  ;;  %v1864_v34 = vsel %vm1848_vm11, %v1828_v50, %v1863_v40 }
 0x211   :  { %v1704_v26 = vmax.f32 %v1702_v14, %v1703_v25  ;;  %v1700_v12 = vmax.f32 %v1698_v9, %v1699_v5  ;;  %v1717_v20 = vrot.slane %v1716_v11, 1  ;;  %v1749_v62 = vpack.c.bf16 %v1712_v7, %v1712_v7 }
 0x212   :  { %v1865_v58 = vsel %vm1850_vm12, %v1829_v21, %v1864_v34 }
 0x213   :  { %v1705_v24 = vrot.slane %v1704_v26, 1  ;;  %v1747_v48 = vpack.c.bf16 %v1700_v12, %v1700_v12  ;;  %v1718_v33 = vmax.f32 %v1716_v11, %v1717_v20  ;;  %v1836_v43 = vunpack.c.l.b16 %v1749_v62 }
 0x215   :  { %v1706_v55 = vmax.f32 %v1704_v26, %v1705_v24  ;;  %v1834_v29 = vunpack.c.l.b16 %v1747_v48  ;;  %v1750_v54 = vpack.c.bf16 %v1718_v33, %v1718_v33 }
 0x217   :  { %v1748_v35 = vpack.c.bf16 %v1706_v55, %v1706_v55  ;;  %v1869_v47 = vsel %vm1844_vm9, %v1834_v29, %v1868_v61  ;;  %v1837_v27 = vunpack.c.l.b16 %v1750_v54 }
 0x219   :  { %v1835_v8 = vunpack.c.l.b16 %v1748_v35 }
 0x21b   :  { %v1870_v0 = vsel %vm1846_vm10, %v1835_v8, %v1869_v47 }
 0x21c   :  { %v1871_v39 = vsel %vm1848_vm11, %v1836_v43, %v1870_v0 }
 0x21d   :  { %v1872_v45 = vsel %vm1850_vm12, %v1837_v27, %v1871_v39 }
 0x21e   :  { %v1874_v2 = vpack.c.b16 %v1872_v45, %v1865_v58 }
 0x220   :  { %2415 = vmatmul.mubr.bf16.vlgmr.msra.gmra.mxu1 %v1874_v2 }
 0x2e0   :  { %v2416_v18 = vpop.f32.mrf.mxu1 }
 0x2e1   :  { %v1968_v13 = vadd.f32 %v2416_v18, %v2217_v4 }
 0x2e2   :  { %v1959_v42 = vpop.f32.mrf.mxu1 }
 0x2e3   :  { %1976 = vst [vmem:[#allocation2 + $0x10] sm:$0xff] %v1968_v13  ;;  %v1960_v63 = vadd.f32 %v2217_v4, %v1959_v42 }
 0x2e4   :  { %v2417_v46 = vpop.f32.mrf.mxu1 }
 0x2e5   :  { %1974 = vst [vmem:[#allocation2] sm:$0xff] %v1960_v63  ;;  %v1971_v3 = vadd.f32 %v2417_v46, %v2217_v4 }
 0x2e6   :  { %v1962_v22 = vpop.f32.mrf.mxu1 }
 0x2e7   :  { %1977 = vst [vmem:[#allocation2 + $0x18] sm:$0xff] %v1971_v3  ;;  %v1963_v30 = vadd.f32 %v2217_v4, %v1962_v22 }
 0x2e9   :  { %1975 = vst [vmem:[#allocation2 + $0x8] sm:$0xff] %v1963_v30 }
 0x2ea   :  { %2454 = shalt.err (!%p2451_p4)
}
 0x2eb   :  { %s2468_s4 = smov 128   ;;  %s2469_s14 = smov 8  }
 0x2ec   :  { %1989 = dma.vmem_to_hbm [thread:$0]  %s1984_s12, 512, %s3259_s5, [#allocation3], %s2468_s4, %s2468_s4, %s2469_s14  }
 0x2ed   :  { %2463 = dma.done.wait [#allocation3], 512  }
 0x2ee   :  { %2464 = vsyncadd [#allocation3], 4294966784 }
 0x2ef   :  { %1993 = vsyncpa [#allocation3], 1 }

</bundles_post_ra>
